<compile_context>
chip_gen: v5e
topology: v5e:2x2
jax: 0.10.0
libtpu: 0.0.40
codegen_flags: <defaults>
</compile_context>

<pallas_src>
import functools

import jax
import jax.numpy as jnp
from jax.experimental import pallas as pl
from jax.experimental.pallas import tpu as pltpu

HIDDEN = 512


def encoder_kernel(x_ref,
                   w1_ref, b1_ref,
                   w2_ref, b2_ref,
                   w3_ref, b3_ref,
                   w4_ref, b4_ref,
                   out_ref):
    """One batch-tile of the full MLP forward pass (all matmuls on the MXU)."""
    x = x_ref[...]  # bf16 (tile_b, x_dim)

    h = jnp.dot(x, w1_ref[...], preferred_element_type=jnp.float32) + b1_ref[...]
    h = jnp.tanh(h.astype(jnp.bfloat16))
    h = jnp.dot(h, w2_ref[...], preferred_element_type=jnp.float32) + b2_ref[...]
    h = jnp.tanh(h.astype(jnp.bfloat16))
    h = jnp.dot(h, w3_ref[...], preferred_element_type=jnp.float32) + b3_ref[...]
    h = jnp.tanh(h.astype(jnp.bfloat16))
    y = jnp.dot(h, w4_ref[...], preferred_element_type=jnp.float32) + b4_ref[...]

    out_ref[...] = y.astype(out_ref.dtype)


def _round_up(n, m):
    return ((n + m - 1) // m) * m


def _choose_tile(batch, tile_b):
    """Pick a batch tile: big MXU fill, but keep >=2 grid steps when possible."""
    tile = min(tile_b, _round_up(batch, 8))
    if _round_up(batch, tile) == tile:
        # Single grid step: split across 2 TensorCores (v7x) if each half
        # still gives a decent MXU fill.
        half = _round_up((batch + 1) // 2, 8)
        if half >= 128:
            tile = half
    return tile


@functools.partial(jax.jit, static_argnames=("tile_b",))
def _encoder_forward_padded(x, params, *, tile_b):
    """x: (padded_B, x_dim) bf16 with padded_B % tile_b == 0."""
    padded_B, x_dim = x.shape
    z_dim = params["w4"].shape[1]

    # Weights/biases stay resident in VMEM across the batch grid (index_map -> 0).
    w_spec = lambda shape: pl.BlockSpec(shape, lambda i: (0, 0))

    grid_spec = pltpu.PrefetchScalarGridSpec(
        num_scalar_prefetch=0,
        grid=(padded_B // tile_b,),
        in_specs=[
            pl.BlockSpec((tile_b, x_dim), lambda i: (i, 0)),       # x tile
            w_spec((x_dim, HIDDEN)), w_spec((1, HIDDEN)),          # layer 1
            w_spec((HIDDEN, HIDDEN)), w_spec((1, HIDDEN)),         # layer 2
            w_spec((HIDDEN, HIDDEN)), w_spec((1, HIDDEN)),         # layer 3
            w_spec((HIDDEN, z_dim)), w_spec((1, z_dim)),           # layer 4
        ],
        out_specs=pl.BlockSpec((tile_b, z_dim), lambda i: (i, 0)),
    )

    return pl.pallas_call(
        encoder_kernel,
        out_shape=jax.ShapeDtypeStruct((padded_B, z_dim), jnp.float32),
        grid_spec=grid_spec,
        compiler_params=pltpu.CompilerParams(
            dimension_semantics=("parallel",)),
    )(x,
      params["w1"], params["b1"],
      params["w2"], params["b2"],
      params["w3"], params["b3"],
      params["w4"], params["b4"])


def encoder_forward(x, params, *, tile_b=256):
    """x: (B, x_dim) float32; params: dict of bf16 weights / f32 biases.

    Returns (B, z_dim) float32.
    """
    B, x_dim = x.shape
    tile = _choose_tile(B, tile_b)
    padded_B = _round_up(B, tile)

    xb = x.astype(jnp.bfloat16)
    if padded_B != B:
        xb = jnp.concatenate(
            [xb, jnp.zeros((padded_B - B, x_dim), jnp.bfloat16)], axis=0)

    out = _encoder_forward_padded(xb, params, tile_b=tile)
    return out[:B]


def init_params(key, x_dim, z_dim):
    """Deterministic init mimicking nn.Linear's U(-1/sqrt(fan_in), 1/sqrt(fan_in)).

    Weights stored bf16 (MXU-native), biases f32 (added post-accumulation).
    """
    def linear(key, fan_in, fan_out):
        kw, kb = jax.random.split(key)
        bound = 1.0 / jnp.sqrt(fan_in)
        w = jax.random.uniform(kw, (fan_in, fan_out), jnp.float32, -bound, bound)
        b = jax.random.uniform(kb, (1, fan_out), jnp.float32, -bound, bound)
        return w.astype(jnp.bfloat16), b

    k1, k2, k3, k4 = jax.random.split(key, 4)
    w1, b1 = linear(k1, x_dim, HIDDEN)
    w2, b2 = linear(k2, HIDDEN, HIDDEN)
    w3, b3 = linear(k3, HIDDEN, HIDDEN)
    w4, b4 = linear(k4, HIDDEN, z_dim)
    return dict(w1=w1, b1=b1, w2=w2, b2=b2, w3=w3, b3=b3, w4=w4, b4=b4)


def encoder_reference(x, p):
    """Pure-JAX reference mimicking the kernel's dtypes (bf16 mm / f32 acc)."""
    h = x.astype(jnp.bfloat16)
    h = jnp.tanh((jnp.dot(h, p["w1"], preferred_element_type=jnp.float32)
                  + p["b1"]).astype(jnp.bfloat16))
    h = jnp.tanh((jnp.dot(h, p["w2"], preferred_element_type=jnp.float32)
                  + p["b2"]).astype(jnp.bfloat16))
    h = jnp.tanh((jnp.dot(h, p["w3"], preferred_element_type=jnp.float32)
                  + p["b3"]).astype(jnp.bfloat16))
    return jnp.dot(h, p["w4"], preferred_element_type=jnp.float32) + p["b4"]


if __name__ == "__main__":
    key = jax.random.PRNGKey(0)
    k_param, k_x = jax.random.split(key)

    B, x_dim, z_dim = 16, 32, 16
    params = init_params(k_param, x_dim, z_dim)
    x = jax.random.normal(k_x, (B, x_dim), jnp.float32)

    out = encoder_forward(x, params)
    out = jax.block_until_ready(out)

    ref = encoder_reference(x, params)
    assert out.shape == (B, z_dim)
    assert bool(jnp.all(jnp.isfinite(out)))
    assert jnp.allclose(out, ref, atol=5e-2, rtol=5e-2), "mismatch vs reference"

    print("KERNEL_OK")
</pallas_src>

<mosaic_0001>
module attributes {stable_mosaic.version = 11 : i64} {
  func.func @encoder_kernel(%arg0: i32, %arg1: memref<16x32xbf16, #tpu.memory_space<vmem>>, %arg2: memref<32x512xbf16, #tpu.memory_space<vmem>>, %arg3: memref<1x512xf32, #tpu.memory_space<vmem>>, %arg4: memref<512x512xbf16, #tpu.memory_space<vmem>>, %arg5: memref<1x512xf32, #tpu.memory_space<vmem>>, %arg6: memref<512x512xbf16, #tpu.memory_space<vmem>>, %arg7: memref<1x512xf32, #tpu.memory_space<vmem>>, %arg8: memref<512x16xbf16, #tpu.memory_space<vmem>>, %arg9: memref<1x16xf32, #tpu.memory_space<vmem>>, %arg10: memref<16x16xf32, #tpu.memory_space<vmem>>) attributes {dimension_semantics = [#tpu.dimension_semantics<parallel>], iteration_bounds = array<i64: 1>, scalar_prefetch = 0 : i64, scratch_operands = 0 : i64, tpu.core_type = #tpu.core_type<tc>, window_params = [{transform_indices = @transform_0, window_bounds = array<i64: 16, 32>}, {pipeline_mode = #tpu.pipeline_mode<synchronous>, transform_indices = @transform_1, window_bounds = array<i64: 32, 512>}, {pipeline_mode = #tpu.pipeline_mode<synchronous>, transform_indices = @transform_2, window_bounds = array<i64: 1, 512>}, {pipeline_mode = #tpu.pipeline_mode<synchronous>, transform_indices = @transform_3, window_bounds = array<i64: 512, 512>}, {pipeline_mode = #tpu.pipeline_mode<synchronous>, transform_indices = @transform_4, window_bounds = array<i64: 1, 512>}, {pipeline_mode = #tpu.pipeline_mode<synchronous>, transform_indices = @transform_5, window_bounds = array<i64: 512, 512>}, {pipeline_mode = #tpu.pipeline_mode<synchronous>, transform_indices = @transform_6, window_bounds = array<i64: 1, 512>}, {pipeline_mode = #tpu.pipeline_mode<synchronous>, transform_indices = @transform_7, window_bounds = array<i64: 512, 16>}, {pipeline_mode = #tpu.pipeline_mode<synchronous>, transform_indices = @transform_8, window_bounds = array<i64: 1, 16>}, {transform_indices = @transform_9, window_bounds = array<i64: 16, 16>}]} {
    %c0 = arith.constant 0 : index
    %c0_0 = arith.constant 0 : index
    %0 = vector.load %arg1[%c0, %c0_0] : memref<16x32xbf16, #tpu.memory_space<vmem>>, vector<16x32xbf16>
    %c0_1 = arith.constant 0 : index
    %c0_2 = arith.constant 0 : index
    %1 = vector.load %arg2[%c0_1, %c0_2] : memref<32x512xbf16, #tpu.memory_space<vmem>>, vector<32x512xbf16>
    %cst = arith.constant dense<0.000000e+00> : vector<16x512xf32>
    %2 = tpu.matmul %0, %1, %cst {dimension_numbers = #tpu.dot_dimension_numbers<[1], [0], [0], [1], [0, 0, 1, 1], [], []>} : vector<16x32xbf16>, vector<32x512xbf16>, vector<16x512xf32> -> vector<16x512xf32>
    %c0_3 = arith.constant 0 : index
    %c0_4 = arith.constant 0 : index
    %3 = vector.load %arg3[%c0_3, %c0_4] : memref<1x512xf32, #tpu.memory_space<vmem>>, vector<1x512xf32>
    %4 = vector.broadcast %3 : vector<1x512xf32> to vector<16x512xf32>
    %5 = arith.addf %2, %4 : vector<16x512xf32>
    %6 = arith.truncf %5 : vector<16x512xf32> to vector<16x512xbf16>
    %7 = math.tanh %6 : vector<16x512xbf16>
    %c0_5 = arith.constant 0 : index
    %c0_6 = arith.constant 0 : index
    %8 = vector.load %arg4[%c0_5, %c0_6] : memref<512x512xbf16, #tpu.memory_space<vmem>>, vector<512x512xbf16>
    %cst_7 = arith.constant dense<0.000000e+00> : vector<16x512xf32>
    %9 = tpu.matmul %7, %8, %cst_7 {dimension_numbers = #tpu.dot_dimension_numbers<[1], [0], [0], [1], [0, 0, 1, 1], [], []>} : vector<16x512xbf16>, vector<512x512xbf16>, vector<16x512xf32> -> vector<16x512xf32>
    %c0_8 = arith.constant 0 : index
    %c0_9 = arith.constant 0 : index
    %10 = vector.load %arg5[%c0_8, %c0_9] : memref<1x512xf32, #tpu.memory_space<vmem>>, vector<1x512xf32>
    %11 = vector.broadcast %10 : vector<1x512xf32> to vector<16x512xf32>
    %12 = arith.addf %9, %11 : vector<16x512xf32>
    %13 = arith.truncf %12 : vector<16x512xf32> to vector<16x512xbf16>
    %14 = math.tanh %13 : vector<16x512xbf16>
    %c0_10 = arith.constant 0 : index
    %c0_11 = arith.constant 0 : index
    %15 = vector.load %arg6[%c0_10, %c0_11] : memref<512x512xbf16, #tpu.memory_space<vmem>>, vector<512x512xbf16>
    %cst_12 = arith.constant dense<0.000000e+00> : vector<16x512xf32>
    %16 = tpu.matmul %14, %15, %cst_12 {dimension_numbers = #tpu.dot_dimension_numbers<[1], [0], [0], [1], [0, 0, 1, 1], [], []>} : vector<16x512xbf16>, vector<512x512xbf16>, vector<16x512xf32> -> vector<16x512xf32>
    %c0_13 = arith.constant 0 : index
    %c0_14 = arith.constant 0 : index
    %17 = vector.load %arg7[%c0_13, %c0_14] : memref<1x512xf32, #tpu.memory_space<vmem>>, vector<1x512xf32>
    %18 = vector.broadcast %17 : vector<1x512xf32> to vector<16x512xf32>
    %19 = arith.addf %16, %18 : vector<16x512xf32>
    %20 = arith.truncf %19 : vector<16x512xf32> to vector<16x512xbf16>
    %21 = math.tanh %20 : vector<16x512xbf16>
    %c0_15 = arith.constant 0 : index
    %c0_16 = arith.constant 0 : index
    %22 = vector.load %arg8[%c0_15, %c0_16] : memref<512x16xbf16, #tpu.memory_space<vmem>>, vector<512x16xbf16>
    %cst_17 = arith.constant dense<0.000000e+00> : vector<16x16xf32>
    %23 = tpu.matmul %21, %22, %cst_17 {dimension_numbers = #tpu.dot_dimension_numbers<[1], [0], [0], [1], [0, 0, 1, 1], [], []>} : vector<16x512xbf16>, vector<512x16xbf16>, vector<16x16xf32> -> vector<16x16xf32>
    %c0_18 = arith.constant 0 : index
    %c0_19 = arith.constant 0 : index
    %24 = vector.load %arg9[%c0_18, %c0_19] : memref<1x16xf32, #tpu.memory_space<vmem>>, vector<1x16xf32>
    %25 = vector.broadcast %24 : vector<1x16xf32> to vector<16x16xf32>
    %26 = arith.addf %23, %25 : vector<16x16xf32>
    %c0_20 = arith.constant 0 : index
    %c0_21 = arith.constant 0 : index
    %27 = vector.load %arg10[%c0_20, %c0_21] : memref<16x16xf32, #tpu.memory_space<vmem>>, vector<16x16xf32>
    tpu.vector_store %arg10[%c0_20, %c0_21], %26 {strides = array<i32>} : memref<16x16xf32, #tpu.memory_space<vmem>>, vector<16x16xf32>,
    return
  }
  func.func @transform_0(%arg0: i32) -> (i32, i32) {
    %c0_i32 = arith.constant 0 : i32
    %c0_i32_0 = arith.constant 0 : i32
    return %arg0, %c0_i32 : i32, i32
  }
  func.func @transform_1(%arg0: i32) -> (i32, i32) {
    %c0_i32 = arith.constant 0 : i32
    %c0_i32_0 = arith.constant 0 : i32
    %c0_i32_1 = arith.constant 0 : i32
    return %c0_i32, %c0_i32_0 : i32, i32
  }
  func.func @transform_2(%arg0: i32) -> (i32, i32) {
    %c0_i32 = arith.constant 0 : i32
    %c0_i32_0 = arith.constant 0 : i32
    %c0_i32_1 = arith.constant 0 : i32
    return %c0_i32, %c0_i32_0 : i32, i32
  }
  func.func @transform_3(%arg0: i32) -> (i32, i32) {
    %c0_i32 = arith.constant 0 : i32
    %c0_i32_0 = arith.constant 0 : i32
    %c0_i32_1 = arith.constant 0 : i32
    return %c0_i32, %c0_i32_0 : i32, i32
  }
  func.func @transform_4(%arg0: i32) -> (i32, i32) {
    %c0_i32 = arith.constant 0 : i32
    %c0_i32_0 = arith.constant 0 : i32
    %c0_i32_1 = arith.constant 0 : i32
    return %c0_i32, %c0_i32_0 : i32, i32
  }
  func.func @transform_5(%arg0: i32) -> (i32, i32) {
    %c0_i32 = arith.constant 0 : i32
    %c0_i32_0 = arith.constant 0 : i32
    %c0_i32_1 = arith.constant 0 : i32
    return %c0_i32, %c0_i32_0 : i32, i32
  }
  func.func @transform_6(%arg0: i32) -> (i32, i32) {
    %c0_i32 = arith.constant 0 : i32
    %c0_i32_0 = arith.constant 0 : i32
    %c0_i32_1 = arith.constant 0 : i32
    return %c0_i32, %c0_i32_0 : i32, i32
  }
  func.func @transform_7(%arg0: i32) -> (i32, i32) {
    %c0_i32 = arith.constant 0 : i32
    %c0_i32_0 = arith.constant 0 : i32
    %c0_i32_1 = arith.constant 0 : i32
    return %c0_i32, %c0_i32_0 : i32, i32
  }
  func.func @transform_8(%arg0: i32) -> (i32, i32) {
    %c0_i32 = arith.constant 0 : i32
    %c0_i32_0 = arith.constant 0 : i32
    %c0_i32_1 = arith.constant 0 : i32
    return %c0_i32, %c0_i32_0 : i32, i32
  }
  func.func @transform_9(%arg0: i32) -> (i32, i32) {
    %c0_i32 = arith.constant 0 : i32
    %c0_i32_0 = arith.constant 0 : i32
    return %arg0, %c0_i32 : i32, i32
  }
}

</mosaic_0001>

<bundles_post_ra>
// kernel: _encoder_forward_padded.1
= control target key start
LH: loop header
LB: loop body
LE: loop exit
PB: predicated region body
PF: predicated region fallthrough
CT: control target
= control target key end

     0   :  { %14 = vsyncpa [#allocation3], 0  ;;  %s4521_s0 = inlined_call_operand.vmem [shape: bf16[16,32], index: 0, kind: input, shape index: {}]   ;;  %s4522_s1 = inlined_call_operand.vmem [shape: bf16[32,512], index: 1, kind: input, shape index: {}]   ;;  %s4523_s2 = inlined_call_operand.vmem [shape: f32[1,512], index: 2, kind: input, shape index: {}]   ;;  %s4524_s3 = inlined_call_operand.hbm [shape: bf16[512,512], index: 3, kind: input, shape index: {}]   ;;  %s4525_s4 = inlined_call_operand.vmem [shape: f32[1,512], index: 4, kind: input, shape index: {}]   ;;  %s4526_s5 = inlined_call_operand.hbm [shape: bf16[512,512], index: 5, kind: input, shape index: {}]   ;;  %s4527_s6 = inlined_call_operand.vmem [shape: f32[1,512], index: 6, kind: input, shape index: {}]   ;;  %s4528_s7 = inlined_call_operand.vmem [shape: bf16[512,16], index: 7, kind: input, shape index: {}]   ;;  %s4529_s8 = inlined_call_operand.vmem [shape: f32[1,16], index: 8, kind: input, shape index: {}]   ;;  %s4530_s9 = inlined_call_operand.hbm [shape: f32[16,16], index: 9, kind: output, shape index: {}]  }
   0x1   :  { %15 = vsyncpa [#allocation6], 0 }
   0x2   :  { %16 = vsyncpa [#allocation4], 0  ;;  %s27_s11 = sshll.u32 %s4524_s3, 4  ;;  %s4229_s12 = smov [#allocation2]   ;;  %s28_s11 = int_to_ptr.hbm [resolvable:$true] %s27_s11 }
   0x3   :  { %s29_s13 = sshll.u32 %s4229_s12, 4  ;;  %s42_s16 = sshll.u32 %s4526_s5, 4  ;;  %s30_s13 = int_to_ptr.vmem [resolvable:$true] %s29_s13  ;;  %s43_s16 = int_to_ptr.hbm [resolvable:$true] %s42_s16 }
   0x4   :  { %s4230_s17 = smov 256   ;;  %s4231_s18 = smov 16  }
   0x5   :  { %35 = dma.hbm_to_vmem [thread:$0]  %s28_s11, 16384, %s30_s13, [#allocation3], %s4230_s17, %s4230_s17, %s4231_s18  }
   0x6   :  { %s4232_s19 = smov [#allocation5]  }
   0x7   :  { %s44_s20 = sshll.u32 %s4232_s19, 4  ;;  %s45_s20 = int_to_ptr.vmem [resolvable:$true] %s44_s20 }
   0x8   :  { %50 = dma.hbm_to_vmem [thread:$0]  %s43_s16, 16384, %s45_s20, [#allocation6], %s4230_s17, %s4230_s17, %s4231_s18  }
   0x9   :  { %4223 = dma.done.wait [#allocation3], 16384  }
   0xa   :  { %4224 = vsyncadd [#allocation3], 4294950912 }
   0xb   :  { %4225 = dma.done.wait [#allocation6], 16384  }
   0xc   :  { %4226 = vsyncadd [#allocation6], 4294950912  ;;  %v2628_v0 = vld [vmem:[%s4522_s1 + $0x20] sm:$0xf]  ;;  %v3805_v1 = vld [vmem:[%s4522_s1 + $0x2c] sm:$0xf0] }
   0xd   :  { %v3803_v2 = vld [vmem:[%s4522_s1 + $0x24] sm:$0xf]  ;;  %v2629_v3 = vor.u32 %v3805_v1, %v2628_v0  ;;  %v2630_v4 = vld [vmem:[%s4522_s1 + $0x30] sm:$0xf0]  ;;  %v2636_v5 = vld [vmem:[%s4522_s1 + $0x28] sm:$0xf] }
   0xe   :  { %v3806_v6 = vld [vmem:[%s4522_s1 + $0x34] sm:$0xf0]  ;;  %v2633_v7 = vor.u32 %v3803_v2, %v2630_v4  ;;  %v3804_v9 = vld [vmem:[%s4522_s1 + $0x2c] sm:$0xf]  ;;  %v2638_v10 = vld [vmem:[%s4522_s1 + $0x38] sm:$0xf0] }
   0xf   :  { %v2637_v8 = vor.u32 %v3806_v6, %v2636_v5  ;;  %v2612_v11 = vld [vmem:[%s4522_s1] sm:$0xf]  ;;  %141 = vmatpush.bf16.msra.mxu0 %v2629_v3  ;;  %v2641_v12 = vor.u32 %v3804_v9, %v2638_v10  ;;  %v3801_v13 = vld [vmem:[%s4522_s1 + $0xc] sm:$0xf0]  ;;  %v3799_v14 = vld [vmem:[%s4522_s1 + $0x4] sm:$0xf] }
  0x10   :  { %v2614_v15 = vld [vmem:[%s4522_s1 + $0x10] sm:$0xf0]  ;;  %155 = vmatpush.bf16.msra.mxu1 %v2633_v7  ;;  %v2613_v16 = vor.u32 %v3801_v13, %v2612_v11  ;;  %v2620_v18 = vld [vmem:[%s4522_s1 + $0x8] sm:$0xf]  ;;  %v3802_v19 = vld [vmem:[%s4522_s1 + $0x14] sm:$0xf0] }
  0x11   :  { %169 = vmatpush.bf16.msra.mxu2 %v2637_v8  ;;  %v2617_v17 = vor.u32 %v3799_v14, %v2614_v15  ;;  %v3800_v20 = vld [vmem:[%s4522_s1 + $0xc] sm:$0xf]  ;;  %183 = vmatpush.bf16.msra.mxu3 %v2641_v12  ;;  %v2621_v21 = vor.u32 %v3802_v19, %v2620_v18  ;;  %v2622_v22 = vld [vmem:[%s4522_s1 + $0x18] sm:$0xf0]  ;;  %v3798_v23 = vld [vmem:[%s4521_s0] sm:$0xff]  ;;  %vm131_vm0 = vcmask 261120  }
  0x12   :  { %v2760_v24 = vld [vmem:[#allocation2 + $0xe0] sm:$0xf]  ;;  %v2625_v25 = vor.u32 %v3800_v20, %v2622_v22  ;;  %v3837_v26 = vld [vmem:[#allocation2 + $0xec] sm:$0xf0]  ;;  %vm2583_vm1 = vcmask 130048   ;;  %s4233_s20 = smov [#allocation7]  }
  0x13   :  { %v2888_v27 = vld [vmem:[#allocation2 + $0x1e0] sm:$0xf]  ;;  %v3869_v28 = vld [vmem:[#allocation2 + $0x1ec] sm:$0xf0]  ;;  %142 = vmatpush.bf16.msra.mxu0 %v2613_v16  ;;  %v2761_v29 = vor.u32 %v3837_v26, %v2760_v24  ;;  %s2590_s3 = sshll.u32 %s4233_s20, 4  ;;  %s4234_s23 = smov 128   ;;  %s2591_s3 = int_to_ptr.vmem [resolvable:$true] %s2590_s3 }
  0x14   :  { %v2889_v30 = vor.u32 %v3869_v28, %v2888_v27  ;;  %v2744_v31 = vld [vmem:[#allocation2 + $0xc0] sm:$0xf]  ;;  %v3833_v32 = vld [vmem:[#allocation2 + $0xcc] sm:$0xf0]  ;;  %156 = vmatpush.bf16.msra.mxu1 %v2617_v17  ;;  %s4235_s5 = smov 8  }
  0x15   :  { %v2872_v33 = vld [vmem:[#allocation2 + $0x1c0] sm:$0xf]  ;;  %170 = vmatpush.bf16.msra.mxu2 %v2621_v21  ;;  %v3865_v34 = vld [vmem:[#allocation2 + $0x1cc] sm:$0xf0]  ;;  %184 = vmatpush.bf16.msra.mxu3 %v2625_v25  ;;  %v2745_v37 = vor.u32 %v3833_v32, %v2744_v31 }
  0x16   :  { %v3016_v35 = vld [vmem:[#allocation2 + $0x2e0] sm:$0xf]  ;;  %v3901_v36 = vld [vmem:[#allocation2 + $0x2ec] sm:$0xf0]  ;;  %2642 = vmatmul.msk.bf16.vlgmr.msra.gmra.mxu0 %vm131_vm0, %v3798_v23  ;;  %v2873_v42 = vor.u32 %v3865_v34, %v2872_v33 }
  0x17   :  { %993 = vmatpush.bf16.msrb.mxu0 %v2761_v29  ;;  %v3017_v38 = vor.u32 %v3901_v36, %v3016_v35  ;;  %v3144_v39 = vld [vmem:[#allocation2 + $0x3e0] sm:$0xf]  ;;  %v3933_v40 = vld [vmem:[#allocation2 + $0x3ec] sm:$0xf0]  ;;  %2643 = vmatmul.msk.bf16.vlgmr.msra.gmra.mxu1 %vm131_vm0, %v3798_v23 }
  0x18   :  { %v2728_v41 = vld [vmem:[#allocation2 + $0xa0] sm:$0xf]  ;;  %1007 = vmatpush.bf16.msrb.mxu1 %v2889_v30  ;;  %v3145_v43 = vor.u32 %v3933_v40, %v3144_v39  ;;  %v3829_v44 = vld [vmem:[#allocation2 + $0xac] sm:$0xf0]  ;;  %2644 = vmatmul.msk.bf16.vlgmr.msra.gmra.mxu2 %vm131_vm0, %v3798_v23 }
  0x19   :  { %v2856_v45 = vld [vmem:[#allocation2 + $0x1a0] sm:$0xf]  ;;  %v3861_v46 = vld [vmem:[#allocation2 + $0x1ac] sm:$0xf0]  ;;  %2645 = vmatmul.msk.bf16.vlgmr.msra.gmra.mxu3 %vm131_vm0, %v3798_v23  ;;  %1021 = vmatpush.bf16.msrb.mxu2 %v3017_v38  ;;  %v2729_v52 = vor.u32 %v3829_v44, %v2728_v41 }
  0x1a   :  { %v3000_v47 = vld [vmem:[#allocation2 + $0x2c0] sm:$0xf]  ;;  %v3897_v48 = vld [vmem:[#allocation2 + $0x2cc] sm:$0xf0]  ;;  %1035 = vmatpush.bf16.msrb.mxu3 %v3145_v43  ;;  %v2857_v57 = vor.u32 %v3861_v46, %v2856_v45 }
  0x1b   :  { %v3128_v49 = vld [vmem:[#allocation2 + $0x3c0] sm:$0xf]  ;;  %v3001_v50 = vor.u32 %v3897_v48, %v3000_v47  ;;  %v3929_v51 = vld [vmem:[#allocation2 + $0x3cc] sm:$0xf0]  ;;  %994 = vmatpush.bf16.msrb.mxu0 %v2745_v37  ;;  %v3835_v47 = vld [vmem:[#allocation2 + $0xe4] sm:$0xf] }
  0x1c   :  { %v3129_v53 = vor.u32 %v3929_v51, %v3128_v49  ;;  %v2712_v54 = vld [vmem:[#allocation2 + $0x80] sm:$0xf]  ;;  %v3825_v55 = vld [vmem:[#allocation2 + $0x8c] sm:$0xf0]  ;;  %1008 = vmatpush.bf16.msrb.mxu1 %v2873_v42  ;;  %v2762_v48 = vld [vmem:[#allocation2 + $0xf0] sm:$0xf0] }
  0x1d   :  { %v2984_v56 = vld [vmem:[#allocation2 + $0x2a0] sm:$0xf]  ;;  %v3893_v58 = vld [vmem:[#allocation2 + $0x2ac] sm:$0xf0]  ;;  %1022 = vmatpush.bf16.msrb.mxu2 %v3001_v50  ;;  %v2713_v0 = vor.u32 %v3825_v55, %v2712_v54  ;;  %v3867_v49 = vld [vmem:[#allocation2 + $0x1e4] sm:$0xf]  ;;  %v2765_v55 = vor.u32 %v3835_v47, %v2762_v48 }
  0x1e   :  { %v3112_v59 = vld [vmem:[#allocation2 + $0x3a0] sm:$0xf]  ;;  %v3925_v60 = vld [vmem:[#allocation2 + $0x3ac] sm:$0xf0]  ;;  %v2985_v63 = vor.u32 %v3893_v58, %v2984_v56  ;;  %1036 = vmatpush.bf16.msrb.mxu3 %v3129_v53  ;;  %v2890_v50 = vld [vmem:[#allocation2 + $0x1f0] sm:$0xf0] }
  0x1f   :  { %v2840_v61 = vld [vmem:[#allocation2 + $0x180] sm:$0xf]  ;;  %v3857_v62 = vld [vmem:[#allocation2 + $0x18c] sm:$0xf0]  ;;  %995 = vmatpush.bf16.msrb.mxu0 %v2729_v52  ;;  %v3113_v1 = vor.u32 %v3925_v60, %v3112_v59  ;;  %v2893_v56 = vor.u32 %v3867_v49, %v2890_v50  ;;  %v2746_v58 = vld [vmem:[#allocation2 + $0xd0] sm:$0xf0] }
  0x20   :  { %v2696_v2 = vld [vmem:[#allocation2 + $0x60] sm:$0xf]  ;;  %v3889_v4 = vld [vmem:[#allocation2 + $0x28c] sm:$0xf0]  ;;  %1009 = vmatpush.bf16.msrb.mxu1 %v2857_v57  ;;  %v2841_v5 = vor.u32 %v3857_v62, %v2840_v61  ;;  %v3831_v57 = vld [vmem:[#allocation2 + $0xc4] sm:$0xf] }
  0x21   :  { %v2968_v3 = vld [vmem:[#allocation2 + $0x280] sm:$0xf]  ;;  %v3821_v6 = vld [vmem:[#allocation2 + $0x6c] sm:$0xf0]  ;;  %1023 = vmatpush.bf16.msrb.mxu2 %v2985_v63  ;;  %v3863_v59 = vld [vmem:[#allocation2 + $0x1c4] sm:$0xf]  ;;  %v2749_v61 = vor.u32 %v3831_v57, %v2746_v58 }
  0x22   :  { %v3096_v7 = vld [vmem:[#allocation2 + $0x380] sm:$0xf]  ;;  %v3921_v8 = vld [vmem:[#allocation2 + $0x38c] sm:$0xf0]  ;;  %v2969_v11 = vor.u32 %v3889_v4, %v2968_v3  ;;  %1037 = vmatpush.bf16.msrb.mxu3 %v3113_v1  ;;  %v2697_v12 = vor.u32 %v3821_v6, %v2696_v2  ;;  %v2874_v60 = vld [vmem:[#allocation2 + $0x1d0] sm:$0xf0] }
  0x23   :  { %v2824_v9 = vld [vmem:[#allocation2 + $0x160] sm:$0xf]  ;;  %v3853_v10 = vld [vmem:[#allocation2 + $0x16c] sm:$0xf0]  ;;  %996 = vmatpush.bf16.msrb.mxu0 %v2713_v0  ;;  %v3097_v13 = vor.u32 %v3921_v8, %v3096_v7  ;;  %v2877_v62 = vor.u32 %v3863_v59, %v2874_v60  ;;  %v3899_v4 = vld [vmem:[#allocation2 + $0x2e4] sm:$0xf] }
  0x24   :  { %v2680_v14 = vld [vmem:[#allocation2 + $0x40] sm:$0xf]  ;;  %v3885_v16 = vld [vmem:[#allocation2 + $0x26c] sm:$0xf0]  ;;  %1010 = vmatpush.bf16.msrb.mxu1 %v2841_v5  ;;  %v2825_v17 = vor.u32 %v3853_v10, %v2824_v9  ;;  %v3018_v5 = vld [vmem:[#allocation2 + $0x2f0] sm:$0xf0] }
  0x25   :  { %v2952_v15 = vld [vmem:[#allocation2 + $0x260] sm:$0xf]  ;;  %v3817_v18 = vld [vmem:[#allocation2 + $0x4c] sm:$0xf0]  ;;  %1024 = vmatpush.bf16.msrb.mxu2 %v2969_v11  ;;  %v3021_v7 = vor.u32 %v3899_v4, %v3018_v5  ;;  %v3931_v8 = vld [vmem:[#allocation2 + $0x3e4] sm:$0xf] }
  0x26   :  { %v3080_v19 = vld [vmem:[#allocation2 + $0x360] sm:$0xf]  ;;  %v3917_v20 = vld [vmem:[#allocation2 + $0x36c] sm:$0xf0]  ;;  %v2953_v23 = vor.u32 %v3885_v16, %v2952_v15  ;;  %1038 = vmatpush.bf16.msrb.mxu3 %v3097_v13  ;;  %v2681_v24 = vor.u32 %v3817_v18, %v2680_v14  ;;  %v3146_v9 = vld [vmem:[#allocation2 + $0x3f0] sm:$0xf0] }
  0x27   :  { %v2808_v21 = vld [vmem:[#allocation2 + $0x140] sm:$0xf]  ;;  %v3849_v22 = vld [vmem:[#allocation2 + $0x14c] sm:$0xf0]  ;;  %997 = vmatpush.bf16.msrb.mxu0 %v2697_v12  ;;  %v3081_v25 = vor.u32 %v3917_v20, %v3080_v19  ;;  %v3149_v10 = vor.u32 %v3931_v8, %v3146_v9  ;;  %v3827_v11 = vld [vmem:[#allocation2 + $0xa4] sm:$0xf] }
  0x28   :  { %v2664_v26 = vld [vmem:[#allocation2 + $0x20] sm:$0xf]  ;;  %v3881_v28 = vld [vmem:[#allocation2 + $0x24c] sm:$0xf0]  ;;  %1011 = vmatpush.bf16.msrb.mxu1 %v2825_v17  ;;  %v2809_v29 = vor.u32 %v3849_v22, %v2808_v21  ;;  %v2730_v12 = vld [vmem:[#allocation2 + $0xb0] sm:$0xf0] }
  0x29   :  { %v2936_v27 = vld [vmem:[#allocation2 + $0x240] sm:$0xf]  ;;  %v3813_v30 = vld [vmem:[#allocation2 + $0x2c] sm:$0xf0]  ;;  %1025 = vmatpush.bf16.msrb.mxu2 %v2953_v23  ;;  %v3859_v13 = vld [vmem:[#allocation2 + $0x1a4] sm:$0xf]  ;;  %v2733_v14 = vor.u32 %v3827_v11, %v2730_v12 }
  0x2a   :  { %v3064_v31 = vld [vmem:[#allocation2 + $0x340] sm:$0xf]  ;;  %v3913_v32 = vld [vmem:[#allocation2 + $0x34c] sm:$0xf0]  ;;  %v2937_v35 = vor.u32 %v3881_v28, %v2936_v27  ;;  %1039 = vmatpush.bf16.msrb.mxu3 %v3081_v25  ;;  %v2665_v37 = vor.u32 %v3813_v30, %v2664_v26  ;;  %v2858_v15 = vld [vmem:[#allocation2 + $0x1b0] sm:$0xf0] }
  0x2b   :  { %v2792_v33 = vld [vmem:[#allocation2 + $0x120] sm:$0xf]  ;;  %v3845_v34 = vld [vmem:[#allocation2 + $0x12c] sm:$0xf0]  ;;  %998 = vmatpush.bf16.msrb.mxu0 %v2681_v24  ;;  %v3065_v38 = vor.u32 %v3913_v32, %v3064_v31  ;;  %v3895_v16 = vld [vmem:[#allocation2 + $0x2c4] sm:$0xf]  ;;  %v2861_v18 = vor.u32 %v3859_v13, %v2858_v15 }
  0x2c   :  { %v2648_v36 = vld [vmem:[#allocation2] sm:$0xf]  ;;  %v3809_v39 = vld [vmem:[#allocation2 + $0xc] sm:$0xf0]  ;;  %1012 = vmatpush.bf16.msrb.mxu1 %v2809_v29  ;;  %v2793_v42 = vor.u32 %v3845_v34, %v2792_v33  ;;  %v3002_v17 = vld [vmem:[#allocation2 + $0x2d0] sm:$0xf0] }
  0x2d   :  { %v2920_v40 = vld [vmem:[#allocation2 + $0x220] sm:$0xf]  ;;  %v3877_v41 = vld [vmem:[#allocation2 + $0x22c] sm:$0xf0]  ;;  %1026 = vmatpush.bf16.msrb.mxu2 %v2937_v35  ;;  %v2649_v52 = vor.u32 %v3809_v39, %v2648_v36  ;;  %v3005_v19 = vor.u32 %v3895_v16, %v3002_v17  ;;  %v3927_v20 = vld [vmem:[#allocation2 + $0x3c4] sm:$0xf] }
  0x2e   :  { %v2776_v43 = vld [vmem:[#allocation2 + $0x100] sm:$0xf]  ;;  %v3909_v45 = vld [vmem:[#allocation2 + $0x32c] sm:$0xf0]  ;;  %v2921_v51 = vor.u32 %v3877_v41, %v2920_v40  ;;  %1040 = vmatpush.bf16.msrb.mxu3 %v3065_v38  ;;  %v3130_v21 = vld [vmem:[#allocation2 + $0x3d0] sm:$0xf0] }
  0x2f   :  { %v3048_v44 = vld [vmem:[#allocation2 + $0x320] sm:$0xf]  ;;  %v3841_v46 = vld [vmem:[#allocation2 + $0x10c] sm:$0xf0]  ;;  %999 = vmatpush.bf16.msrb.mxu0 %v2665_v37  ;;  %v3133_v22 = vor.u32 %v3927_v20, %v3130_v21  ;;  %v3823_v23 = vld [vmem:[#allocation2 + $0x84] sm:$0xf] }
  0x30   :  { %v3049_v53 = vor.u32 %v3909_v45, %v3048_v44  ;;  %1013 = vmatpush.bf16.msrb.mxu1 %v2793_v42  ;;  %v2777_v54 = vor.u32 %v3841_v46, %v2776_v43  ;;  %v2904_v63 = vld [vmem:[#allocation2 + $0x200] sm:$0xf]  ;;  %v3873_v0 = vld [vmem:[#allocation2 + $0x20c] sm:$0xf0]  ;;  %v2714_v24 = vld [vmem:[#allocation2 + $0x90] sm:$0xf0] }
  0x31   :  { %1027 = vmatpush.bf16.msrb.mxu2 %v2921_v51  ;;  %v3032_v1 = vld [vmem:[#allocation2 + $0x300] sm:$0xf]  ;;  %v2905_v2 = vor.u32 %v3873_v0, %v2904_v63  ;;  %v3905_v3 = vld [vmem:[#allocation2 + $0x30c] sm:$0xf0]  ;;  %v3855_v25 = vld [vmem:[#allocation2 + $0x184] sm:$0xf]  ;;  %v2717_v26 = vor.u32 %v3823_v23, %v2714_v24 }
  0x32   :  { %1041 = vmatpush.bf16.msrb.mxu3 %v3049_v53  ;;  %v3033_v6 = vor.u32 %v3905_v3, %v3032_v1  ;;  %v2842_v27 = vld [vmem:[#allocation2 + $0x190] sm:$0xf0]  ;;  %v3891_v29 = vld [vmem:[#allocation2 + $0x2a4] sm:$0xf] }
  0x33   :  { %1000 = vmatpush.bf16.msrb.mxu0 %v2649_v52  ;;  %v2845_v28 = vor.u32 %v3855_v25, %v2842_v27  ;;  %v2986_v30 = vld [vmem:[#allocation2 + $0x2b0] sm:$0xf0]  ;;  %v3923_v31 = vld [vmem:[#allocation2 + $0x3a4] sm:$0xf]  ;;  %v76_v27 = vld [vmem:[%s4523_s2] sm:$0xf] }
  0x34   :  { %1014 = vmatpush.bf16.msrb.mxu1 %v2777_v54  ;;  %v2989_v32 = vor.u32 %v3891_v29, %v2986_v30  ;;  %v3114_v33 = vld [vmem:[#allocation2 + $0x3b0] sm:$0xf0]  ;;  %v3819_v35 = vld [vmem:[#allocation2 + $0x64] sm:$0xf]  ;;  %v79_v29 = vperm.slane %v76_v27, 1 }
  0x35   :  { %1028 = vmatpush.bf16.msrb.mxu2 %v2905_v2  ;;  %v3117_v34 = vor.u32 %v3923_v31, %v3114_v33  ;;  %v2698_v36 = vld [vmem:[#allocation2 + $0x70] sm:$0xf0]  ;;  %v3851_v37 = vld [vmem:[#allocation2 + $0x164] sm:$0xf] }
  0x36   :  { %1042 = vmatpush.bf16.msrb.mxu3 %v3033_v6  ;;  %v2701_v38 = vor.u32 %v3819_v35, %v2698_v36  ;;  %v2826_v39 = vld [vmem:[#allocation2 + $0x170] sm:$0xf0]  ;;  %v3887_v41 = vld [vmem:[#allocation2 + $0x284] sm:$0xf] }
  0x37   :  { %1049 = vmatpush.bf16.msra.mxu0 %v2765_v55  ;;  %v2829_v40 = vor.u32 %v3851_v37, %v2826_v39  ;;  %v2970_v42 = vld [vmem:[#allocation2 + $0x290] sm:$0xf0]  ;;  %v3919_v43 = vld [vmem:[#allocation2 + $0x384] sm:$0xf]  ;;  %v80_v39 = vperm.slane %v76_v27, 2 }
  0x38   :  { %1063 = vmatpush.bf16.msra.mxu1 %v2893_v56  ;;  %v2973_v44 = vor.u32 %v3887_v41, %v2970_v42  ;;  %v3098_v45 = vld [vmem:[#allocation2 + $0x390] sm:$0xf0]  ;;  %v3815_v47 = vld [vmem:[#allocation2 + $0x44] sm:$0xf]  ;;  %v81_v41 = vperm.slane %v76_v27, 3 }
  0x39   :  { %1077 = vmatpush.bf16.msra.mxu2 %v3021_v7  ;;  %v3101_v46 = vor.u32 %v3919_v43, %v3098_v45  ;;  %v2682_v48 = vld [vmem:[#allocation2 + $0x50] sm:$0xf0]  ;;  %v3847_v49 = vld [vmem:[#allocation2 + $0x144] sm:$0xf] }
  0x3a   :  { %1091 = vmatpush.bf16.msra.mxu3 %v3149_v10  ;;  %v2685_v50 = vor.u32 %v3815_v47, %v2682_v48  ;;  %v2810_v51 = vld [vmem:[#allocation2 + $0x150] sm:$0xf0]  ;;  %v3883_v53 = vld [vmem:[#allocation2 + $0x264] sm:$0xf] }
  0x3b   :  { %1050 = vmatpush.bf16.msra.mxu0 %v2749_v61  ;;  %v2813_v52 = vor.u32 %v3847_v49, %v2810_v51  ;;  %v2954_v54 = vld [vmem:[#allocation2 + $0x270] sm:$0xf0]  ;;  %v3915_v55 = vld [vmem:[#allocation2 + $0x364] sm:$0xf] }
  0x3c   :  { %1064 = vmatpush.bf16.msra.mxu1 %v2877_v62  ;;  %v2957_v56 = vor.u32 %v3883_v53, %v2954_v54  ;;  %v3082_v57 = vld [vmem:[#allocation2 + $0x370] sm:$0xf0]  ;;  %v3811_v59 = vld [vmem:[#allocation2 + $0x24] sm:$0xf]  ;;  %v2768_v54 = vld [vmem:[#allocation2 + $0xe8] sm:$0xf] }
  0x3d   :  { %1078 = vmatpush.bf16.msra.mxu2 %v3005_v19  ;;  %v3085_v58 = vor.u32 %v3915_v55, %v3082_v57  ;;  %v2666_v60 = vld [vmem:[#allocation2 + $0x30] sm:$0xf0]  ;;  %v3843_v61 = vld [vmem:[#allocation2 + $0x124] sm:$0xf]  ;;  %v3838_v55 = vld [vmem:[#allocation2 + $0xf4] sm:$0xf0] }
  0x3e   :  { %1092 = vmatpush.bf16.msra.mxu3 %v3133_v22  ;;  %v2669_v62 = vor.u32 %v3811_v59, %v2666_v60  ;;  %v2794_v63 = vld [vmem:[#allocation2 + $0x130] sm:$0xf0]  ;;  %v3879_v1 = vld [vmem:[#allocation2 + $0x244] sm:$0xf] }
  0x3f   :  { %1051 = vmatpush.bf16.msra.mxu0 %v2733_v14  ;;  %v2797_v0 = vor.u32 %v3843_v61, %v2794_v63  ;;  %v2938_v2 = vld [vmem:[#allocation2 + $0x250] sm:$0xf0]  ;;  %v3911_v3 = vld [vmem:[#allocation2 + $0x344] sm:$0xf]  ;;  %v2896_v61 = vld [vmem:[#allocation2 + $0x1e8] sm:$0xf] }
  0x40   :  { %1065 = vmatpush.bf16.msra.mxu1 %v2861_v18  ;;  %v2941_v4 = vor.u32 %v3879_v1, %v2938_v2  ;;  %v3066_v5 = vld [vmem:[#allocation2 + $0x350] sm:$0xf0]  ;;  %v3807_v7 = vld [vmem:[#allocation2 + $0x4] sm:$0xf] }
  0x41   :  { %1079 = vmatpush.bf16.msra.mxu2 %v2989_v32  ;;  %v3069_v6 = vor.u32 %v3911_v3, %v3066_v5  ;;  %v2650_v8 = vld [vmem:[#allocation2 + $0x10] sm:$0xf0]  ;;  %v3839_v9 = vld [vmem:[#allocation2 + $0x104] sm:$0xf]  ;;  %v2752_v3 = vld [vmem:[#allocation2 + $0xc8] sm:$0xf] }
  0x42   :  { %1093 = vmatpush.bf16.msra.mxu3 %v3117_v34  ;;  %v2653_v10 = vor.u32 %v3807_v7, %v2650_v8  ;;  %v2778_v11 = vld [vmem:[#allocation2 + $0x110] sm:$0xf0]  ;;  %v3875_v13 = vld [vmem:[#allocation2 + $0x224] sm:$0xf]  ;;  %v2880_v8 = vld [vmem:[#allocation2 + $0x1c8] sm:$0xf] }
  0x43   :  { %1052 = vmatpush.bf16.msra.mxu0 %v2717_v26  ;;  %v2781_v12 = vor.u32 %v3839_v9, %v2778_v11  ;;  %v2922_v14 = vld [vmem:[#allocation2 + $0x230] sm:$0xf0]  ;;  %v3907_v15 = vld [vmem:[#allocation2 + $0x324] sm:$0xf]  ;;  %v3866_v9 = vld [vmem:[#allocation2 + $0x1d4] sm:$0xf0] }
  0x44   :  { %1066 = vmatpush.bf16.msra.mxu1 %v2845_v28  ;;  %v3050_v16 = vld [vmem:[#allocation2 + $0x330] sm:$0xf0]  ;;  %v2925_v17 = vor.u32 %v3875_v13, %v2922_v14  ;;  %v3871_v19 = vld [vmem:[#allocation2 + $0x204] sm:$0xf]  ;;  %v78_v28 = vperm.slane %v76_v27, 0 }
  0x45   :  { %1080 = vmatpush.bf16.msra.mxu2 %v2973_v44  ;;  %v3053_v18 = vor.u32 %v3907_v15, %v3050_v16  ;;  %v2906_v20 = vld [vmem:[#allocation2 + $0x210] sm:$0xf0]  ;;  %v3903_v21 = vld [vmem:[#allocation2 + $0x304] sm:$0xf]  ;;  %v3024_v11 = vld [vmem:[#allocation2 + $0x2e8] sm:$0xf]  ;;  %v2881_v16 = vor.u32 %v3866_v9, %v2880_v8 }
  0x46   :  { %1094 = vmatpush.bf16.msra.mxu3 %v3101_v46  ;;  %v2909_v22 = vor.u32 %v3871_v19, %v2906_v20  ;;  %v3034_v23 = vld [vmem:[#allocation2 + $0x310] sm:$0xf0]  ;;  %v2736_v13 = vld [vmem:[#allocation2 + $0xa8] sm:$0xf]  ;;  %v3830_v14 = vld [vmem:[#allocation2 + $0xb4] sm:$0xf0] }
  0x47   :  { %1053 = vmatpush.bf16.msra.mxu0 %v2701_v38  ;;  %v3037_v25 = vor.u32 %v3903_v21, %v3034_v23  ;;  %v2864_v21 = vld [vmem:[#allocation2 + $0x1a8] sm:$0xf]  ;;  %v3898_v27 = vld [vmem:[#allocation2 + $0x2d4] sm:$0xf0] }
  0x48   :  { %1067 = vmatpush.bf16.msra.mxu1 %v2829_v40  ;;  %v3088_v8 = vld [vmem:[#allocation2 + $0x368] sm:$0xf]  ;;  %v3918_v9 = vld [vmem:[#allocation2 + $0x374] sm:$0xf0] }
  0x49   :  { %1081 = vmatpush.bf16.msra.mxu2 %v2957_v56 }
  0x4a   :  { %1095 = vmatpush.bf16.msra.mxu3 %v3085_v58 }
  0x4b   :  { %1054 = vmatpush.bf16.msra.mxu0 %v2685_v50 }
  0x4c   :  { %1068 = vmatpush.bf16.msra.mxu1 %v2813_v52 }
  0x4d   :  { %1082 = vmatpush.bf16.msra.mxu2 %v2941_v4  ;;  %v3834_v4 = vld [vmem:[#allocation2 + $0xd4] sm:$0xf0] }
  0x4e   :  { %1096 = vmatpush.bf16.msra.mxu3 %v3069_v6 }
  0x4f   :  { %1055 = vmatpush.bf16.msra.mxu0 %v2669_v62  ;;  %v3870_v62 = vld [vmem:[#allocation2 + $0x1f4] sm:$0xf0] }
  0x50   :  { %1069 = vmatpush.bf16.msra.mxu1 %v2797_v0  ;;  %v2769_v0 = vor.u32 %v3838_v55, %v2768_v54  ;;  %v2897_v6 = vor.u32 %v3870_v62, %v2896_v61  ;;  %v2688_v55 = vld [vmem:[#allocation2 + $0x48] sm:$0xf]  ;;  %v3850_v62 = vld [vmem:[#allocation2 + $0x154] sm:$0xf0] }
  0x51   :  { %1083 = vmatpush.bf16.msra.mxu2 %v2925_v17  ;;  %v3152_v17 = vld [vmem:[#allocation2 + $0x3e8] sm:$0xf] }
  0x52   :  { %1097 = vmatpush.bf16.msra.mxu3 %v3053_v18  ;;  %v3934_v18 = vld [vmem:[#allocation2 + $0x3f4] sm:$0xf0]  ;;  %v2816_v61 = vld [vmem:[#allocation2 + $0x148] sm:$0xf] }
  0x53   :  { %1056 = vmatpush.bf16.msra.mxu0 %v2653_v10  ;;  %v2753_v10 = vor.u32 %v3834_v4, %v2752_v3  ;;  %v2672_v4 = vld [vmem:[#allocation2 + $0x28] sm:$0xf] }
  0x54   :  { %1070 = vmatpush.bf16.msra.mxu1 %v2781_v12  ;;  %v3902_v12 = vld [vmem:[#allocation2 + $0x2f4] sm:$0xf0] }
  0x55   :  { %1084 = vmatpush.bf16.msra.mxu2 %v2909_v22  ;;  %v3025_v20 = vor.u32 %v3902_v12, %v3024_v11  ;;  %v3862_v22 = vld [vmem:[#allocation2 + $0x1b4] sm:$0xf0]  ;;  %v2800_v11 = vld [vmem:[#allocation2 + $0x128] sm:$0xf] }
  0x56   :  { %1098 = vmatpush.bf16.msra.mxu3 %v3037_v25  ;;  %v2737_v25 = vor.u32 %v3830_v14, %v2736_v13  ;;  %v3846_v12 = vld [vmem:[#allocation2 + $0x134] sm:$0xf0]  ;;  %v2944_v14 = vld [vmem:[#allocation2 + $0x248] sm:$0xf] }
  0x93   :  { %v144_v24 = vpop.f32.mrf.mxu0 }
  0x94   :  { %v158_v26 = vpop.f32.mrf.mxu1  ;;  %v145_v30 = vadd.f32 %v144_v24, %v78_v28 }
  0x95   :  { %v159_v32 = vadd.f32 %v158_v26, %v79_v29  ;;  %v3008_v26 = vld [vmem:[#allocation2 + $0x2c8] sm:$0xf] }
  0x9b   :  { %v172_v31 = vpop.f32.mrf.mxu2  ;;  %v146_v34 = vpop.f32.mrf.mxu0 }
  0x9c   :  { %v186_v33 = vpop.f32.mrf.mxu3  ;;  %v147_v35 = vadd.f32 %v146_v34, %v78_v28  ;;  %v160_v36 = vpop.f32.mrf.mxu1  ;;  %v173_v47 = vadd.f32 %v172_v31, %v80_v39  ;;  %v3826_v31 = vld [vmem:[#allocation2 + $0x94] sm:$0xf0]  ;;  %v3136_v34 = vld [vmem:[#allocation2 + $0x3c8] sm:$0xf] }
  0x9d   :  { %v161_v37 = vadd.f32 %v160_v36, %v79_v29  ;;  %v187_v50 = vadd.f32 %v186_v33, %v81_v41  ;;  %v3153_v29 = vor.u32 %v3934_v18, %v3152_v17  ;;  %v2865_v33 = vor.u32 %v3862_v22, %v2864_v21  ;;  %v3072_v17 = vld [vmem:[#allocation2 + $0x348] sm:$0xf]  ;;  %v3914_v21 = vld [vmem:[#allocation2 + $0x354] sm:$0xf0]  ;;  %v3836_v22 = vld [vmem:[#allocation2 + $0xec] sm:$0xf] }
  0x9e   :  { %v191_v38 = vpack.c.bf16 %v147_v35, %v145_v30  ;;  %v2720_v30 = vld [vmem:[#allocation2 + $0x88] sm:$0xf]  ;;  %v3930_v35 = vld [vmem:[#allocation2 + $0x3d4] sm:$0xf0]  ;;  %v3009_v36 = vor.u32 %v3898_v27, %v3008_v26 }
  0x9f   :  { %v192_v40 = vpack.c.bf16 %v161_v37, %v159_v32  ;;  %v2848_v37 = vld [vmem:[#allocation2 + $0x188] sm:$0xf]  ;;  %v3842_v27 = vld [vmem:[#allocation2 + $0x114] sm:$0xf0] }
  0xa0   :  { %v195_v42 = vunpack.c.l.bf16 %v191_v38  ;;  %v199_v43 = vunpack.c.h.bf16 %v191_v38  ;;  %v3858_v38 = vld [vmem:[#allocation2 + $0x194] sm:$0xf0]  ;;  %v2656_v18 = vld [vmem:[#allocation2 + $0x8] sm:$0xf] }
  0xa1   :  { %v196_v44 = vunpack.c.l.bf16 %v192_v40  ;;  %v200_v45 = vunpack.c.h.bf16 %v192_v40  ;;  %v2992_v40 = vld [vmem:[#allocation2 + $0x2a8] sm:$0xf] }
  0xa2   :  { %4103 = vtanh.f32 %v195_v42  ;;  %v3137_v42 = vor.u32 %v3930_v35, %v3136_v34  ;;  %v2784_v26 = vld [vmem:[#allocation2 + $0x108] sm:$0xf]  ;;  %v3073_v34 = vor.u32 %v3914_v21, %v3072_v17  ;;  %v3924_v17 = vld [vmem:[#allocation2 + $0x3ac] sm:$0xf]  ;;  %v2706_v21 = vld [vmem:[#allocation2 + $0x78] sm:$0xf0] }
  0xa3   :  { %v174_v46 = vpop.f32.mrf.mxu2  ;;  %4105 = vtanh.f32 %v199_v43  ;;  %v2704_v43 = vld [vmem:[#allocation2 + $0x68] sm:$0xf] }
  0xa4   :  { %v175_v48 = vadd.f32 %v174_v46, %v80_v39  ;;  %v188_v49 = vpop.f32.mrf.mxu3  ;;  %4107 = vtanh.f32 %v196_v44  ;;  %v2721_v39 = vor.u32 %v3826_v31, %v2720_v30  ;;  %v3822_v44 = vld [vmem:[#allocation2 + $0x74] sm:$0xf0]  ;;  %v3120_v46 = vld [vmem:[#allocation2 + $0x3a8] sm:$0xf]  ;;  %v2898_v30 = vld [vmem:[#allocation2 + $0x1f8] sm:$0xf0] }
  0xa5   :  { %v189_v51 = vadd.f32 %v188_v49, %v81_v41  ;;  %4109 = vtanh.f32 %v200_v45  ;;  %v3894_v41 = vld [vmem:[#allocation2 + $0x2b4] sm:$0xf0]  ;;  %v2849_v45 = vor.u32 %v3858_v38, %v2848_v37  ;;  %v2832_v49 = vld [vmem:[#allocation2 + $0x168] sm:$0xf] }
  0xa6   :  { %v193_v52 = vpack.c.bf16 %v175_v48, %v173_v47  ;;  %v3926_v47 = vld [vmem:[#allocation2 + $0x3b4] sm:$0xf0]  ;;  %v2993_v48 = vor.u32 %v3894_v41, %v2992_v40  ;;  %v2928_v31 = vld [vmem:[#allocation2 + $0x228] sm:$0xf]  ;;  %v3832_v41 = vld [vmem:[#allocation2 + $0xcc] sm:$0xf] }
  0xa7   :  { %v194_v53 = vpack.c.bf16 %v189_v51, %v187_v50  ;;  %v3854_v50 = vld [vmem:[#allocation2 + $0x174] sm:$0xf0]  ;;  %v2705_v51 = vor.u32 %v3822_v44, %v2704_v43  ;;  %v3121_v54 = vor.u32 %v3926_v47, %v3120_v46  ;;  %v3056_v37 = vld [vmem:[#allocation2 + $0x328] sm:$0xf]  ;;  %v3864_v43 = vld [vmem:[#allocation2 + $0x1cc] sm:$0xf] }
  0xa8   :  { %v197_v56 = vunpack.c.l.bf16 %v193_v52  ;;  %v201_v57 = vunpack.c.h.bf16 %v193_v52  ;;  %v4104_v58 = vpop.eup %4103  ;;  %v2976_v52 = vld [vmem:[#allocation2 + $0x288] sm:$0xf]  ;;  %v3910_v38 = vld [vmem:[#allocation2 + $0x334] sm:$0xf0]  ;;  %v2882_v44 = vld [vmem:[#allocation2 + $0x1d8] sm:$0xf0] }
  0xa9   :  { %v198_v59 = vunpack.c.l.bf16 %v194_v53  ;;  %v202_v60 = vunpack.c.h.bf16 %v194_v53  ;;  %v4106_v63 = vpop.eup %4105  ;;  %v3890_v53 = vld [vmem:[#allocation2 + $0x294] sm:$0xf0]  ;;  %v3057_v47 = vor.u32 %v3910_v38, %v3056_v37  ;;  %v3848_v37 = vld [vmem:[#allocation2 + $0x14c] sm:$0xf]  ;;  %v2818_v38 = vld [vmem:[#allocation2 + $0x158] sm:$0xf0] }
  0xaa   :  { %4111 = vtanh.f32 %v197_v56  ;;  %v4108_v1 = vpop.eup %4107  ;;  %v4350_v2 = vpack.c.bf16 %v4106_v63, %v4104_v58  ;;  %v3818_v56 = vld [vmem:[#allocation2 + $0x54] sm:$0xf0]  ;;  %v3104_v58 = vld [vmem:[#allocation2 + $0x388] sm:$0xf] }
  0xab   :  { %4113 = vtanh.f32 %v201_v57  ;;  %v4110_v5 = vpop.eup %4109  ;;  %v2833_v57 = vor.u32 %v3854_v50, %v2832_v49  ;;  %v2689_v63 = vor.u32 %v3818_v56, %v2688_v55  ;;  %v3874_v46 = vld [vmem:[#allocation2 + $0x214] sm:$0xf0]  ;;  %v3026_v49 = vld [vmem:[#allocation2 + $0x2f8] sm:$0xf0] }
  0xac   :  { %4115 = vtanh.f32 %v198_v59  ;;  %1001 = vmatmul.bf16.vlgmr.msrb.gmra.mxu0 %v4350_v2  ;;  %v4353_v7 = vpack.c.bf16 %v4110_v5, %v4108_v1  ;;  %v3922_v59 = vld [vmem:[#allocation2 + $0x394] sm:$0xf0]  ;;  %v3154_v56 = vld [vmem:[#allocation2 + $0x3f8] sm:$0xf0] }
  0xad   :  { %4117 = vtanh.f32 %v202_v60  ;;  %1105 = vmatpush.bf16.msrb.mxu0 %v2769_v0  ;;  %v2977_v60 = vor.u32 %v3890_v53, %v2976_v52  ;;  %v2960_v0 = vld [vmem:[#allocation2 + $0x268] sm:$0xf]  ;;  %v3886_v1 = vld [vmem:[#allocation2 + $0x274] sm:$0xf0]  ;;  %v3105_v3 = vor.u32 %v3922_v59, %v3104_v58  ;;  %v3932_v53 = vld [vmem:[#allocation2 + $0x3ec] sm:$0xf] }
  0xae   :  { %1015 = vmatmul.bf16.vlgmr.msrb.gmra.mxu1 %v4353_v7  ;;  %v3814_v5 = vld [vmem:[#allocation2 + $0x34] sm:$0xf0]  ;;  %v2738_v58 = vld [vmem:[#allocation2 + $0xb8] sm:$0xf0] }
  0xaf   :  { %1119 = vmatpush.bf16.msrb.mxu1 %v2897_v6  ;;  %v2817_v6 = vor.u32 %v3850_v62, %v2816_v61  ;;  %v2673_v13 = vor.u32 %v3814_v5, %v2672_v4  ;;  %v3906_v52 = vld [vmem:[#allocation2 + $0x314] sm:$0xf0]  ;;  %v2866_v61 = vld [vmem:[#allocation2 + $0x1b8] sm:$0xf0]  ;;  %v3928_v4 = vld [vmem:[#allocation2 + $0x3cc] sm:$0xf] }
  0xb0   :  { %v4112_v15 = vpop.eup %4111 }
  0xb1   :  { %v4114_v19 = vpop.eup %4113  ;;  %1106 = vmatpush.bf16.msrb.mxu0 %v2753_v10  ;;  %v2961_v10 = vor.u32 %v3886_v1, %v2960_v0  ;;  %v3010_v0 = vld [vmem:[#allocation2 + $0x2d8] sm:$0xf0]  ;;  %v3157_v1 = vor.u32 %v3932_v53, %v3154_v56 }
  0xb2   :  { %v4116_v23 = vpop.eup %4115  ;;  %v4356_v24 = vpack.c.bf16 %v4114_v19, %v4112_v15  ;;  %v3882_v15 = vld [vmem:[#allocation2 + $0x254] sm:$0xf0]  ;;  %v3074_v56 = vld [vmem:[#allocation2 + $0x358] sm:$0xf0] }
  0xb3   :  { %v4118_v28 = vpop.eup %4117  ;;  %1120 = vmatpush.bf16.msrb.mxu1 %v2881_v16  ;;  %v3089_v16 = vor.u32 %v3918_v9, %v3088_v8  ;;  %v3810_v19 = vld [vmem:[#allocation2 + $0x14] sm:$0xf0]  ;;  %v3824_v8 = vld [vmem:[#allocation2 + $0x8c] sm:$0xf]  ;;  %v2722_v9 = vld [vmem:[#allocation2 + $0x98] sm:$0xf0] }
  0xb4   :  { %1029 = vmatmul.bf16.vlgmr.msrb.gmra.mxu2 %v4356_v24  ;;  %v4359_v32 = vpack.c.bf16 %v4118_v28, %v4116_v23  ;;  %v2770_v23 = vld [vmem:[#allocation2 + $0xf8] sm:$0xf0]  ;;  %v3868_v28 = vld [vmem:[#allocation2 + $0x1ec] sm:$0xf] }
  0xb5   :  { %1133 = vmatpush.bf16.msrb.mxu2 %v3025_v20  ;;  %1107 = vmatpush.bf16.msrb.mxu0 %v2737_v25  ;;  %v2801_v20 = vor.u32 %v3846_v12, %v2800_v11  ;;  %v2945_v25 = vor.u32 %v3882_v15, %v2944_v14  ;;  %v2773_v35 = vor.u32 %v3836_v22, %v2770_v23  ;;  %v3856_v11 = vld [vmem:[#allocation2 + $0x18c] sm:$0xf]  ;;  %v2850_v12 = vld [vmem:[#allocation2 + $0x198] sm:$0xf0] }
  0xb6   :  { %1043 = vmatmul.bf16.vlgmr.msrb.gmra.mxu3 %v4359_v32  ;;  %v2994_v14 = vld [vmem:[#allocation2 + $0x2b8] sm:$0xf0]  ;;  %v3852_v23 = vld [vmem:[#allocation2 + $0x16c] sm:$0xf] }
  0xb7   :  { %1147 = vmatpush.bf16.msrb.mxu3 %v3153_v29  ;;  %1121 = vmatpush.bf16.msrb.mxu1 %v2865_v33  ;;  %v2657_v29 = vor.u32 %v3810_v19, %v2656_v18  ;;  %v3878_v33 = vld [vmem:[#allocation2 + $0x234] sm:$0xf0]  ;;  %v2853_v18 = vor.u32 %v3856_v11, %v2850_v12  ;;  %v3122_v19 = vld [vmem:[#allocation2 + $0x3b8] sm:$0xf0] }
  0xb8   :  { %v2929_v40 = vor.u32 %v3878_v33, %v2928_v31  ;;  %v3106_v33 = vld [vmem:[#allocation2 + $0x398] sm:$0xf0] }
  0xb9   :  { %1134 = vmatpush.bf16.msrb.mxu2 %v3009_v36  ;;  %1108 = vmatpush.bf16.msrb.mxu0 %v2721_v39  ;;  %v2785_v36 = vor.u32 %v3842_v27, %v2784_v26  ;;  %v2901_v39 = vor.u32 %v3868_v28, %v2898_v30  ;;  %v3888_v26 = vld [vmem:[#allocation2 + $0x28c] sm:$0xf]  ;;  %v2978_v27 = vld [vmem:[#allocation2 + $0x298] sm:$0xf0]  ;;  %v3125_v28 = vor.u32 %v3924_v17, %v3122_v19 }
  0xba   :  { %v3920_v30 = vld [vmem:[#allocation2 + $0x38c] sm:$0xf]  ;;  %v3058_v11 = vld [vmem:[#allocation2 + $0x338] sm:$0xf0] }
  0xbb   :  { %1148 = vmatpush.bf16.msrb.mxu3 %v3137_v42  ;;  %1122 = vmatpush.bf16.msrb.mxu1 %v2849_v45  ;;  %v2754_v42 = vld [vmem:[#allocation2 + $0xd8] sm:$0xf0]  ;;  %v2912_v45 = vld [vmem:[#allocation2 + $0x208] sm:$0xf]  ;;  %v3872_v17 = vld [vmem:[#allocation2 + $0x20c] sm:$0xf] }
  0xbc   :  { %1057 = vmatmul.bf16.vlgmr.msra.gmra.mxu0 %v4350_v2  ;;  %v2757_v50 = vor.u32 %v3832_v41, %v2754_v42  ;;  %v2913_v55 = vor.u32 %v3874_v46, %v2912_v45  ;;  %v3109_v41 = vor.u32 %v3920_v30, %v3106_v33  ;;  %v3090_v45 = vld [vmem:[#allocation2 + $0x378] sm:$0xf0]  ;;  %v3812_v46 = vld [vmem:[#allocation2 + $0x2c] sm:$0xf]  ;;  %v3953_v30 = vld [vmem:[#allocation5 + $0x8c] sm:$0xf0] }
  0xbd   :  { %1135 = vmatpush.bf16.msrb.mxu2 %v2993_v48  ;;  %1109 = vmatpush.bf16.msrb.mxu0 %v2705_v51  ;;  %v3900_v48 = vld [vmem:[#allocation2 + $0x2ec] sm:$0xf]  ;;  %v3040_v51 = vld [vmem:[#allocation2 + $0x308] sm:$0xf]  ;;  %v3208_v33 = vld [vmem:[#allocation5 + $0x60] sm:$0xf] }
  0xbe   :  { %1071 = vmatmul.bf16.vlgmr.msra.gmra.mxu1 %v4353_v7  ;;  %v3029_v59 = vor.u32 %v3900_v48, %v3026_v49  ;;  %v3041_v62 = vor.u32 %v3906_v52, %v3040_v51  ;;  %v3844_v49 = vld [vmem:[#allocation2 + $0x12c] sm:$0xf]  ;;  %v2946_v52 = vld [vmem:[#allocation2 + $0x258] sm:$0xf0] }
  0xbf   :  { %1149 = vmatpush.bf16.msrb.mxu3 %v3121_v54  ;;  %1123 = vmatpush.bf16.msrb.mxu1 %v2833_v57  ;;  %v2885_v54 = vor.u32 %v3864_v43, %v2882_v44  ;;  %v3828_v57 = vld [vmem:[#allocation2 + $0xac] sm:$0xf]  ;;  %v2821_v44 = vor.u32 %v3848_v37, %v2818_v38  ;;  %v3993_v38 = vld [vmem:[#allocation5 + $0x1cc] sm:$0xf0] }
  0xc0   :  { %v3916_v43 = vld [vmem:[#allocation2 + $0x36c] sm:$0xf] }
  0xc1   :  { %1136 = vmatpush.bf16.msrb.mxu2 %v2977_v60  ;;  %1110 = vmatpush.bf16.msrb.mxu0 %v2689_v63  ;;  %v3860_v60 = vld [vmem:[#allocation2 + $0x1ac] sm:$0xf]  ;;  %v3093_v53 = vor.u32 %v3916_v43, %v3090_v45  ;;  %v3989_v43 = vld [vmem:[#allocation5 + $0x1ac] sm:$0xf0] }
  0xc2   :  { %v3896_v63 = vld [vmem:[#allocation2 + $0x2cc] sm:$0xf]  ;;  %v2869_v5 = vor.u32 %v3860_v60, %v2866_v61  ;;  %v2786_v61 = vld [vmem:[#allocation2 + $0x118] sm:$0xf0]  ;;  %v3937_v45 = vld [vmem:[#allocation5 + $0xc] sm:$0xf0] }
  0xc3   :  { %1150 = vmatpush.bf16.msrb.mxu3 %v3105_v3  ;;  %1124 = vmatpush.bf16.msrb.mxu1 %v2817_v6  ;;  %v2741_v3 = vor.u32 %v3828_v57, %v2738_v58  ;;  %v3138_v6 = vld [vmem:[#allocation2 + $0x3d8] sm:$0xf0]  ;;  %v3880_v51 = vld [vmem:[#allocation2 + $0x24c] sm:$0xf] }
  0xc4   :  { %1085 = vmatmul.bf16.vlgmr.msra.gmra.mxu2 %v4356_v24  ;;  %v3141_v15 = vor.u32 %v3928_v4, %v3138_v6  ;;  %v3808_v57 = vld [vmem:[#allocation2 + $0xc] sm:$0xf]  ;;  %v3400_v4 = vld [vmem:[#allocation5 + $0x1e0] sm:$0xf] }
  0xc5   :  { %1137 = vmatpush.bf16.msrb.mxu2 %v2961_v10  ;;  %1111 = vmatpush.bf16.msrb.mxu0 %v2673_v13  ;;  %v3013_v10 = vor.u32 %v3896_v63, %v3010_v0  ;;  %v3892_v13 = vld [vmem:[#allocation2 + $0x2ac] sm:$0xf]  ;;  %v3272_v0 = vld [vmem:[#allocation5 + $0xe0] sm:$0xf] }
  0xc6   :  { %1099 = vmatmul.bf16.vlgmr.msra.gmra.mxu3 %v4359_v32  ;;  %v2997_v22 = vor.u32 %v3892_v13, %v2994_v14  ;;  %v3840_v60 = vld [vmem:[#allocation2 + $0x10c] sm:$0xf]  ;;  %v3256_v14 = vld [vmem:[#allocation5 + $0xc0] sm:$0xf] }
  0xc7   :  { %1151 = vmatpush.bf16.msrb.mxu3 %v3089_v16  ;;  %1125 = vmatpush.bf16.msrb.mxu1 %v2801_v20  ;;  %v2725_v16 = vor.u32 %v3824_v8, %v2722_v9  ;;  %v3820_v20 = vld [vmem:[#allocation2 + $0x6c] sm:$0xf]  ;;  %v2789_v9 = vor.u32 %v3840_v60, %v2786_v61 }
  0xc8   :  { %v3876_v63 = vld [vmem:[#allocation2 + $0x22c] sm:$0xf] }
  0xc9   :  { %1138 = vmatpush.bf16.msrb.mxu2 %v2945_v25  ;;  %1112 = vmatpush.bf16.msrb.mxu0 %v2657_v29  ;;  %v2834_v25 = vld [vmem:[#allocation2 + $0x178] sm:$0xf0]  ;;  %v2709_v29 = vor.u32 %v3820_v20, %v2706_v21  ;;  %v3904_v20 = vld [vmem:[#allocation2 + $0x30c] sm:$0xf] }
  0xca   :  { %v2837_v31 = vor.u32 %v3852_v23, %v2834_v25  ;;  %v3042_v21 = vld [vmem:[#allocation2 + $0x318] sm:$0xf0]  ;;  %v3240_v25 = vld [vmem:[#allocation5 + $0xa0] sm:$0xf] }
  0xcb   :  { %1152 = vmatpush.bf16.msrb.mxu3 %v3073_v34  ;;  %1126 = vmatpush.bf16.msrb.mxu1 %v2785_v36  ;;  %v3816_v34 = vld [vmem:[#allocation2 + $0x4c] sm:$0xf]  ;;  %v2981_v36 = vor.u32 %v3888_v26, %v2978_v27  ;;  %v3957_v26 = vld [vmem:[#allocation5 + $0xac] sm:$0xf0]  ;;  %v3045_v27 = vor.u32 %v3904_v20, %v3042_v21  ;;  %v3480_v20 = vld [vmem:[#allocation5 + $0x280] sm:$0xf] }
  0xcc   :  { %1113 = vmatmul.bf16.vlgmr.msrb.gmra.mxu0 %v4350_v2 }
  0xcd   :  { %1161 = vmatpush.bf16.msra.mxu0 %v2773_v35  ;;  %1139 = vmatpush.bf16.msrb.mxu2 %v2929_v40  ;;  %v2690_v35 = vld [vmem:[#allocation2 + $0x58] sm:$0xf0] }
  0xce   :  { %1127 = vmatmul.bf16.vlgmr.msrb.gmra.mxu1 %v4353_v7  ;;  %v2962_v40 = vld [vmem:[#allocation2 + $0x278] sm:$0xf0]  ;;  %v2693_v42 = vor.u32 %v3816_v34, %v2690_v35  ;;  %v3949_v34 = vld [vmem:[#allocation5 + $0x6c] sm:$0xf0]  ;;  %v3192_v35 = vld [vmem:[#allocation5 + $0x40] sm:$0xf] }
  0xcf   :  { %1175 = vmatpush.bf16.msra.mxu1 %v2901_v39  ;;  %1153 = vmatpush.bf16.msrb.mxu3 %v3057_v47  ;;  %v3884_v39 = vld [vmem:[#allocation2 + $0x26c] sm:$0xf]  ;;  %v2674_v47 = vld [vmem:[#allocation2 + $0x38] sm:$0xf0] }
  0xd0   :  { %v2965_v48 = vor.u32 %v3884_v39, %v2962_v40  ;;  %v3176_v40 = vld [vmem:[#allocation5 + $0x20] sm:$0xf] }
  0xd1   :  { %1162 = vmatpush.bf16.msra.mxu0 %v2757_v50  ;;  %1140 = vmatpush.bf16.msrb.mxu2 %v2913_v55  ;;  %v2802_v50 = vld [vmem:[#allocation2 + $0x138] sm:$0xf0]  ;;  %v3912_v55 = vld [vmem:[#allocation2 + $0x34c] sm:$0xf] }
  0xd2   :  { %v2805_v58 = vor.u32 %v3844_v49, %v2802_v50  ;;  %v3077_v6 = vor.u32 %v3912_v55, %v3074_v56  ;;  %v3963_v49 = vld [vmem:[#allocation5 + $0xe4] sm:$0xf]  ;;  %v3274_v50 = vld [vmem:[#allocation5 + $0xf0] sm:$0xf0]  ;;  %v3528_v55 = vld [vmem:[#allocation5 + $0x2e0] sm:$0xf] }
  0xd3   :  { %1176 = vmatpush.bf16.msra.mxu1 %v2885_v54  ;;  %1154 = vmatpush.bf16.msrb.mxu3 %v3041_v62  ;;  %v2677_v54 = vor.u32 %v3812_v46, %v2674_v47  ;;  %v2949_v62 = vor.u32 %v3880_v51, %v2946_v52  ;;  %v3352_v46 = vld [vmem:[#allocation5 + $0x180] sm:$0xf]  ;;  %v3277_v52 = vor.u32 %v3963_v49, %v3274_v50  ;;  %v4005_v50 = vld [vmem:[#allocation5 + $0x22c] sm:$0xf0] }
  0xd4   :  { %1141 = vmatmul.bf16.vlgmr.msrb.gmra.mxu2 %v4356_v24  ;;  %v3432_v49 = vld [vmem:[#allocation5 + $0x220] sm:$0xf] }
  0xd5   :  { %1189 = vmatpush.bf16.msra.mxu2 %v3029_v59  ;;  %1163 = vmatpush.bf16.msra.mxu0 %v2741_v3  ;;  %v2658_v59 = vld [vmem:[#allocation2 + $0x18] sm:$0xf0] }
  0xd6   :  { %1155 = vmatmul.bf16.vlgmr.msrb.gmra.mxu3 %v4359_v32  ;;  %v2930_v3 = vld [vmem:[#allocation2 + $0x238] sm:$0xf0]  ;;  %v2661_v8 = vor.u32 %v3808_v57, %v2658_v59  ;;  %v4029_v57 = vld [vmem:[#allocation5 + $0x2ec] sm:$0xf0]  ;;  %v3258_v59 = vld [vmem:[#allocation5 + $0xd0] sm:$0xf0] }
  0xd7   :  { %1203 = vmatpush.bf16.msra.mxu3 %v3157_v1  ;;  %1177 = vmatpush.bf16.msra.mxu1 %v2869_v5  ;;  %v3965_v1 = vld [vmem:[#allocation5 + $0xec] sm:$0xf0]  ;;  %v2933_v13 = vor.u32 %v3876_v63, %v2930_v3  ;;  %v3529_v60 = vor.u32 %v4029_v57, %v3528_v55 }
  0xd8   :  { %v3997_v5 = vld [vmem:[#allocation5 + $0x1ec] sm:$0xf0]  ;;  %v3273_v12 = vor.u32 %v3965_v1, %v3272_v0  ;;  %v3512_v0 = vld [vmem:[#allocation5 + $0x2c0] sm:$0xf] }
  0xd9   :  { %1190 = vmatpush.bf16.msra.mxu2 %v3013_v10  ;;  %1164 = vmatpush.bf16.msra.mxu0 %v2725_v16  ;;  %v3908_v10 = vld [vmem:[#allocation2 + $0x32c] sm:$0xf]  ;;  %v3401_v16 = vor.u32 %v3997_v5, %v3400_v4  ;;  %v3977_v63 = vld [vmem:[#allocation5 + $0x14c] sm:$0xf0]  ;;  %v3955_v4 = vld [vmem:[#allocation5 + $0xa4] sm:$0xf] }
  0xda   :  { %v3061_v19 = vor.u32 %v3908_v10, %v3058_v11  ;;  %v4025_v3 = vld [vmem:[#allocation5 + $0x2cc] sm:$0xf0]  ;;  %v3242_v5 = vld [vmem:[#allocation5 + $0xb0] sm:$0xf0]  ;;  %v3496_v11 = vld [vmem:[#allocation5 + $0x2a0] sm:$0xf] }
  0xdb   :  { %1204 = vmatpush.bf16.msra.mxu3 %v3141_v15  ;;  %1178 = vmatpush.bf16.msra.mxu1 %v2853_v18  ;;  %v3961_v15 = vld [vmem:[#allocation5 + $0xcc] sm:$0xf0]  ;;  %v2914_v18 = vld [vmem:[#allocation2 + $0x218] sm:$0xf0] }
  0xdc   :  { %v2917_v23 = vor.u32 %v3872_v17, %v2914_v18  ;;  %v3973_v10 = vld [vmem:[#allocation5 + $0x12c] sm:$0xf0]  ;;  %v3288_v18 = vld [vmem:[#allocation5 + $0x100] sm:$0xf] }
  0xdd   :  { %1191 = vmatpush.bf16.msra.mxu2 %v2997_v22  ;;  %1165 = vmatpush.bf16.msra.mxu0 %v2709_v29  ;;  %v3257_v22 = vor.u32 %v3961_v15, %v3256_v14  ;;  %v3224_v29 = vld [vmem:[#allocation5 + $0x80] sm:$0xf]  ;;  %v3951_v14 = vld [vmem:[#allocation5 + $0x84] sm:$0xf]  ;;  %v3226_v15 = vld [vmem:[#allocation5 + $0x90] sm:$0xf0] }
  0xde   :  { %v3229_v17 = vor.u32 %v3951_v14, %v3226_v15 }
  0xdf   :  { %1205 = vmatpush.bf16.msra.mxu3 %v3125_v28  ;;  %1179 = vmatpush.bf16.msra.mxu1 %v2837_v31  ;;  %v3241_v28 = vor.u32 %v3957_v26, %v3240_v25  ;;  %v3225_v31 = vor.u32 %v3953_v30, %v3224_v29  ;;  %v3210_v25 = vld [vmem:[#allocation5 + $0x70] sm:$0xf0] }
  0xe0   :  { %v3402_v29 = vld [vmem:[#allocation5 + $0x1f0] sm:$0xf0] }
  0xe1   :  { %1192 = vmatpush.bf16.msra.mxu2 %v2981_v36  ;;  %1166 = vmatpush.bf16.msra.mxu0 %v2693_v42  ;;  %v3384_v36 = vld [vmem:[#allocation5 + $0x1c0] sm:$0xf] }
  0xe2   :  { %v3385_v39 = vor.u32 %v3993_v38, %v3384_v36  ;;  %v3368_v42 = vld [vmem:[#allocation5 + $0x1a0] sm:$0xf] }
  0xe3   :  { %1206 = vmatpush.bf16.msra.mxu3 %v3109_v41  ;;  %1180 = vmatpush.bf16.msra.mxu1 %v2821_v44  ;;  %v3941_v41 = vld [vmem:[#allocation5 + $0x2c] sm:$0xf0]  ;;  %v3369_v44 = vor.u32 %v3989_v43, %v3368_v42  ;;  %v3939_v43 = vld [vmem:[#allocation5 + $0x24] sm:$0xf] }
  0xe5   :  { %1193 = vmatpush.bf16.msra.mxu2 %v2965_v48  ;;  %1167 = vmatpush.bf16.msra.mxu0 %v2677_v54  ;;  %v3985_v48 = vld [vmem:[#allocation5 + $0x18c] sm:$0xf0] }
  0xe6   :  { %v3353_v51 = vor.u32 %v3985_v48, %v3352_v46  ;;  %v3981_v54 = vld [vmem:[#allocation5 + $0x16c] sm:$0xf0]  ;;  %v3370_v46 = vld [vmem:[#allocation5 + $0x1b0] sm:$0xf0]  ;;  %v4379_v48 = vld [vmem:[%s4525_s4] sm:$0xf] }
  0xe7   :  { %1207 = vmatpush.bf16.msra.mxu3 %v3093_v53  ;;  %1181 = vmatpush.bf16.msra.mxu1 %v2805_v58  ;;  %v3336_v53 = vld [vmem:[#allocation5 + $0x160] sm:$0xf]  ;;  %v3959_v58 = vld [vmem:[#allocation5 + $0xc4] sm:$0xf]  ;;  %v345_v57 = vperm.slane %v4379_v48, 0 }
  0xe8   :  { %v3337_v56 = vor.u32 %v3981_v54, %v3336_v53  ;;  %v3261_v61 = vor.u32 %v3959_v58, %v3258_v59  ;;  %v3162_v53 = vld [vmem:[#allocation5 + $0x10] sm:$0xf0]  ;;  %v3983_v54 = vld [vmem:[#allocation5 + $0x184] sm:$0xf] }
  0xe9   :  { %1194 = vmatpush.bf16.msra.mxu2 %v2949_v62  ;;  %1168 = vmatpush.bf16.msra.mxu0 %v2661_v8  ;;  %v3320_v62 = vld [vmem:[#allocation5 + $0x140] sm:$0xf]  ;;  %v3245_v8 = vor.u32 %v3955_v4, %v3242_v5 }
  0xea   :  { %v3321_v1 = vor.u32 %v3977_v63, %v3320_v62  ;;  %v3656_v62 = vld [vmem:[#allocation5 + $0x3e0] sm:$0xf] }
  0xeb   :  { %1208 = vmatpush.bf16.msra.mxu3 %v3077_v6  ;;  %1182 = vmatpush.bf16.msra.mxu1 %v2789_v9  ;;  %v3513_v6 = vor.u32 %v4025_v3, %v3512_v0  ;;  %v3304_v9 = vld [vmem:[#allocation5 + $0x120] sm:$0xf]  ;;  %v4061_v0 = vld [vmem:[#allocation5 + $0x3ec] sm:$0xf0]  ;;  %v3338_v3 = vld [vmem:[#allocation5 + $0x170] sm:$0xf0] }
  0xec   :  { %1169 = vmatmul.bf16.vlgmr.msra.gmra.mxu0 %v4350_v2  ;;  %v3209_v2 = vor.u32 %v3949_v34, %v3208_v33  ;;  %v4013_v33 = vld [vmem:[#allocation5 + $0x26c] sm:$0xf0]  ;;  %v3657_v4 = vor.u32 %v4061_v0, %v3656_v62 }
  0xed   :  { %2019 = vmatpush.bf16.msrb.mxu0 %v3273_v12  ;;  %1195 = vmatpush.bf16.msra.mxu2 %v2933_v13  ;;  %v3305_v12 = vor.u32 %v3973_v10, %v3304_v9  ;;  %v4021_v13 = vld [vmem:[#allocation5 + $0x2ac] sm:$0xf0] }
  0xee   :  { %1183 = vmatmul.bf16.vlgmr.msra.gmra.mxu1 %v4353_v7  ;;  %v3945_v7 = vld [vmem:[#allocation5 + $0x4c] sm:$0xf0] }
  0xef   :  { %2033 = vmatpush.bf16.msrb.mxu1 %v3401_v16  ;;  %1209 = vmatpush.bf16.msra.mxu3 %v3061_v19  ;;  %v3193_v37 = vor.u32 %v3945_v7, %v3192_v35  ;;  %v3497_v16 = vor.u32 %v4021_v13, %v3496_v11  ;;  %v3969_v19 = vld [vmem:[#allocation5 + $0x10c] sm:$0xf0]  ;;  %v3194_v35 = vld [vmem:[#allocation5 + $0x50] sm:$0xf0]  ;;  %v3991_v7 = vld [vmem:[#allocation5 + $0x1c4] sm:$0xf] }
  0xf0   :  { %v3289_v21 = vor.u32 %v3969_v19, %v3288_v18  ;;  %v4057_v13 = vld [vmem:[#allocation5 + $0x3cc] sm:$0xf0]  ;;  %v4023_v18 = vld [vmem:[#allocation5 + $0x2c4] sm:$0xf] }
  0xf1   :  { %2020 = vmatpush.bf16.msrb.mxu0 %v3257_v22  ;;  %1196 = vmatpush.bf16.msra.mxu2 %v2917_v23  ;;  %v4017_v22 = vld [vmem:[#allocation5 + $0x28c] sm:$0xf0]  ;;  %v3947_v23 = vld [vmem:[#allocation5 + $0x64] sm:$0xf] }
  0xf2   :  { %v3481_v26 = vor.u32 %v4017_v22, %v3480_v20  ;;  %v4041_v0 = vld [vmem:[#allocation5 + $0x34c] sm:$0xf0] }
  0xf3   :  { %1210 = vmatpush.bf16.msra.mxu3 %v3045_v27  ;;  %2034 = vmatpush.bf16.msrb.mxu1 %v3385_v39  ;;  %v3213_v27 = vor.u32 %v3947_v23, %v3210_v25 }
  0xf4   :  { %1197 = vmatmul.bf16.vlgmr.msra.gmra.mxu2 %v4356_v24  ;;  %v3177_v24 = vor.u32 %v3941_v41, %v3176_v40  ;;  %v3448_v40 = vld [vmem:[#allocation5 + $0x240] sm:$0xf]  ;;  %v4009_v41 = vld [vmem:[#allocation5 + $0x24c] sm:$0xf0] }
  0xf5   :  { %2021 = vmatpush.bf16.msrb.mxu0 %v3241_v28  ;;  %2047 = vmatpush.bf16.msrb.mxu2 %v3529_v60  ;;  %v3995_v28 = vld [vmem:[#allocation5 + $0x1e4] sm:$0xf]  ;;  %v3416_v60 = vld [vmem:[#allocation5 + $0x200] sm:$0xf] }
  0xf6   :  { %1211 = vmatmul.bf16.vlgmr.msra.gmra.mxu3 %v4359_v32  ;;  %v3160_v32 = vld [vmem:[#allocation5] sm:$0xf]  ;;  %v3405_v30 = vor.u32 %v3995_v28, %v3402_v29  ;;  %v3971_v28 = vld [vmem:[#allocation5 + $0x124] sm:$0xf] }
  0xf7   :  { %2035 = vmatpush.bf16.msrb.mxu1 %v3369_v44  ;;  %v3161_v47 = vor.u32 %v3937_v45, %v3160_v32  ;;  %v3178_v44 = vld [vmem:[#allocation5 + $0x30] sm:$0xf0]  ;;  %v3987_v32 = vld [vmem:[#allocation5 + $0x1a4] sm:$0xf]  ;;  %2061 = vmatpush.bf16.msrb.mxu3 %v3657_v4 }
  0xf8   :  { %v3181_v45 = vor.u32 %v3939_v43, %v3178_v44  ;;  %v3290_v43 = vld [vmem:[#allocation5 + $0x110] sm:$0xf0]  ;;  %v4015_v44 = vld [vmem:[#allocation5 + $0x284] sm:$0xf] }
  0xf9   :  { %2022 = vmatpush.bf16.msrb.mxu0 %v3225_v31  ;;  %2048 = vmatpush.bf16.msrb.mxu2 %v3513_v6  ;;  %v3464_v31 = vld [vmem:[#allocation5 + $0x260] sm:$0xf]  ;;  %v4027_v6 = vld [vmem:[#allocation5 + $0x2e4] sm:$0xf] }
  0xfa   :  { %v3465_v34 = vor.u32 %v4013_v33, %v3464_v31  ;;  %v3306_v31 = vld [vmem:[#allocation5 + $0x130] sm:$0xf0]  ;;  %v4019_v33 = vld [vmem:[#allocation5 + $0x2a4] sm:$0xf] }
  0xfb   :  { %2036 = vmatpush.bf16.msrb.mxu1 %v3353_v51  ;;  %v3433_v51 = vor.u32 %v4005_v50, %v3432_v49  ;;  %v4007_v4 = vld [vmem:[#allocation5 + $0x244] sm:$0xf] }
  0xfd   :  { %2023 = vmatpush.bf16.msrb.mxu0 %v3209_v2  ;;  %2049 = vmatpush.bf16.msrb.mxu2 %v3497_v16  ;;  %v3943_v2 = vld [vmem:[#allocation5 + $0x44] sm:$0xf] }
  0xfe   :  { %v3197_v36 = vor.u32 %v3943_v2, %v3194_v35  ;;  %v3975_v16 = vld [vmem:[#allocation5 + $0x144] sm:$0xf]  ;;  %v3309_v2 = vor.u32 %v3971_v28, %v3306_v31  ;;  %v4033_v31 = vld [vmem:[#allocation5 + $0x30c] sm:$0xf0] }
  0xff   :  { %2037 = vmatpush.bf16.msrb.mxu1 %v3337_v56  ;;  %v3354_v56 = vld [vmem:[#allocation5 + $0x190] sm:$0xf0] }
 0x100   :  { %v3357_v59 = vor.u32 %v3983_v54, %v3354_v56 }
 0x101   :  { %2024 = vmatpush.bf16.msrb.mxu0 %v3193_v37  ;;  %2050 = vmatpush.bf16.msrb.mxu2 %v3481_v26  ;;  %v3386_v37 = vld [vmem:[#allocation5 + $0x1d0] sm:$0xf0]  ;;  %v3624_v26 = vld [vmem:[#allocation5 + $0x3a0] sm:$0xf] }
 0x102   :  { %v3389_v39 = vor.u32 %v3991_v7, %v3386_v37 }
 0x103   :  { %2038 = vmatpush.bf16.msrb.mxu1 %v3321_v1  ;;  %v3979_v1 = vld [vmem:[#allocation5 + $0x164] sm:$0xf] }
 0x104   :  { %v3341_v5 = vor.u32 %v3979_v1, %v3338_v3 }
 0x105   :  { %2025 = vmatpush.bf16.msrb.mxu0 %v3177_v24  ;;  %2051 = vmatpush.bf16.msrb.mxu2 %v3465_v34  ;;  %v3449_v24 = vor.u32 %v4009_v41, %v3448_v40  ;;  %v3498_v34 = vld [vmem:[#allocation5 + $0x2b0] sm:$0xf0] }
 0x106   :  { %v3501_v35 = vor.u32 %v4019_v33, %v3498_v34 }
 0x107   :  { %2039 = vmatpush.bf16.msrb.mxu1 %v3305_v12  ;;  %v3640_v12 = vld [vmem:[#allocation5 + $0x3c0] sm:$0xf] }
 0x108   :  { %v3641_v15 = vor.u32 %v4057_v13, %v3640_v12  ;;  %v4037_v12 = vld [vmem:[#allocation5 + $0x32c] sm:$0xf0]  ;;  %v4003_v13 = vld [vmem:[#allocation5 + $0x224] sm:$0xf] }
 0x109   :  { %2026 = vmatpush.bf16.msrb.mxu0 %v3161_v47  ;;  %v3373_v47 = vor.u32 %v3987_v32, %v3370_v46  ;;  %2052 = vmatpush.bf16.msrb.mxu2 %v3449_v24  ;;  %v3482_v46 = vld [vmem:[#allocation5 + $0x290] sm:$0xf0] }
 0x10a   :  { %2062 = vmatpush.bf16.msrb.mxu3 %v3641_v15  ;;  %v3485_v50 = vor.u32 %v4015_v44, %v3482_v46  ;;  %v3280_v15 = vld [vmem:[#allocation5 + $0xe8] sm:$0xf]  ;;  %v4055_v46 = vld [vmem:[#allocation5 + $0x3c4] sm:$0xf] }
 0x10b   :  { %2040 = vmatpush.bf16.msrb.mxu1 %v3289_v21  ;;  %v3514_v21 = vld [vmem:[#allocation5 + $0x2d0] sm:$0xf0] }
 0x10c   :  { %v3517_v25 = vor.u32 %v4023_v18, %v3514_v21  ;;  %v3434_v18 = vld [vmem:[#allocation5 + $0x230] sm:$0xf0] }
 0x10d   :  { %2075 = vmatpush.bf16.msra.mxu0 %v3277_v52  ;;  %v3935_v52 = vld [vmem:[#allocation5 + $0x4] sm:$0xf]  ;;  %2053 = vmatpush.bf16.msrb.mxu2 %v3433_v51  ;;  %v3592_v51 = vld [vmem:[#allocation5 + $0x360] sm:$0xf] }
 0x10e   :  { %v3165_v55 = vor.u32 %v3935_v52, %v3162_v53  ;;  %v4045_v52 = vld [vmem:[#allocation5 + $0x36c] sm:$0xf0]  ;;  %v346_v53 = vperm.slane %v4379_v48, 1 }
 0x10f   :  { %2089 = vmatpush.bf16.msra.mxu1 %v3405_v30  ;;  %v3593_v56 = vor.u32 %v4045_v52, %v3592_v51 }
 0x111   :  { %2076 = vmatpush.bf16.msra.mxu0 %v3261_v61  ;;  %v4001_v61 = vld [vmem:[#allocation5 + $0x20c] sm:$0xf0] }
 0x112   :  { %v3417_v63 = vor.u32 %v4001_v61, %v3416_v60 }
 0x113   :  { %2090 = vmatpush.bf16.msra.mxu1 %v3389_v39  ;;  %v4049_v39 = vld [vmem:[#allocation5 + $0x38c] sm:$0xf0] }
 0x114   :  { %2054 = vmatpush.bf16.msrb.mxu2 %v3417_v63  ;;  %v3576_v63 = vld [vmem:[#allocation5 + $0x340] sm:$0xf] }
 0x115   :  { %2077 = vmatpush.bf16.msra.mxu0 %v3245_v8  ;;  %v3530_v8 = vld [vmem:[#allocation5 + $0x2f0] sm:$0xf0]  ;;  %v3577_v3 = vor.u32 %v4041_v0, %v3576_v63 }
 0x116   :  { %v3533_v10 = vor.u32 %v4027_v6, %v3530_v8 }
 0x117   :  { %2091 = vmatpush.bf16.msra.mxu1 %v3373_v47 }
 0x118   :  { %2103 = vmatpush.bf16.msra.mxu2 %v3533_v10 }
 0x119   :  { %2078 = vmatpush.bf16.msra.mxu0 %v3229_v17  ;;  %v3322_v17 = vld [vmem:[#allocation5 + $0x150] sm:$0xf0] }
 0x11a   :  { %v3325_v20 = vor.u32 %v3975_v16, %v3322_v17  ;;  %v3966_v16 = vld [vmem:[#allocation5 + $0xf4] sm:$0xf0] }
 0x11b   :  { %2092 = vmatpush.bf16.msra.mxu1 %v3357_v59  ;;  %v3281_v28 = vor.u32 %v3966_v16, %v3280_v15 }
 0x11c   :  { %2104 = vmatpush.bf16.msra.mxu2 %v3517_v25  ;;  %v3264_v25 = vld [vmem:[#allocation5 + $0xc8] sm:$0xf] }
 0x11d   :  { %2079 = vmatpush.bf16.msra.mxu0 %v3213_v27  ;;  %v4053_v27 = vld [vmem:[#allocation5 + $0x3ac] sm:$0xf0] }
 0x11e   :  { %v3625_v30 = vor.u32 %v4053_v27, %v3624_v26 }
 0x11f   :  { %2093 = vmatpush.bf16.msra.mxu1 %v3341_v5  ;;  %v3450_v5 = vld [vmem:[#allocation5 + $0x250] sm:$0xf0] }
 0x120   :  { %2063 = vmatpush.bf16.msrb.mxu3 %v3625_v30  ;;  %2105 = vmatpush.bf16.msra.mxu2 %v3501_v35  ;;  %v3453_v8 = vor.u32 %v4007_v4, %v3450_v5  ;;  %v3544_v30 = vld [vmem:[#allocation5 + $0x300] sm:$0xf]  ;;  %v3999_v35 = vld [vmem:[#allocation5 + $0x204] sm:$0xf]  ;;  %v3408_v4 = vld [vmem:[#allocation5 + $0x1e8] sm:$0xf] }
 0x121   :  { %2080 = vmatpush.bf16.msra.mxu0 %v3197_v36  ;;  %v3998_v5 = vld [vmem:[#allocation5 + $0x1f4] sm:$0xf0] }
 0x123   :  { %2094 = vmatpush.bf16.msra.mxu1 %v3325_v20 }
 0x124   :  { %2106 = vmatpush.bf16.msra.mxu2 %v3485_v50 }
 0x125   :  { %2081 = vmatpush.bf16.msra.mxu0 %v3181_v45 }
 0x127   :  { %2095 = vmatpush.bf16.msra.mxu1 %v3309_v2  ;;  %v3545_v2 = vor.u32 %v4033_v31, %v3544_v30 }
 0x129   :  { %v1002_v38 = vpop.f32.mrf.mxu0  ;;  %2082 = vmatpush.bf16.msra.mxu0 %v3165_v55 }
 0x12a   :  { %v1003_v14 = vadd.f32 %v1002_v38, %v345_v57  ;;  %v3608_v38 = vld [vmem:[#allocation5 + $0x380] sm:$0xf] }
 0x12b   :  { %v4374_v42 = vpop.f32.mrf.mxu1  ;;  %v3609_v24 = vor.u32 %v4049_v39, %v3608_v38  ;;  %v3658_v39 = vld [vmem:[#allocation5 + $0x3f0] sm:$0xf0] }
 0x12c   :  { %v1017_v29 = vadd.f32 %v4374_v42, %v1003_v14  ;;  %v3967_v42 = vld [vmem:[#allocation5 + $0x104] sm:$0xf] }
 0x12d   :  { %v3293_v45 = vor.u32 %v3967_v42, %v3290_v43  ;;  %2064 = vmatpush.bf16.msrb.mxu3 %v3609_v24  ;;  %v3248_v43 = vld [vmem:[#allocation5 + $0xa8] sm:$0xf] }
 0x12f   :  { %2096 = vmatpush.bf16.msra.mxu1 %v3293_v45  ;;  %v3958_v45 = vld [vmem:[#allocation5 + $0xb4] sm:$0xf0] }
 0x131   :  { %v1004_v58 = vpop.f32.mrf.mxu0  ;;  %2065 = vmatpush.bf16.msrb.mxu3 %v3593_v56 }
 0x132   :  { %v1005_v22 = vadd.f32 %v1004_v58, %v345_v57  ;;  %v4011_v57 = vld [vmem:[#allocation5 + $0x264] sm:$0xf]  ;;  %v3466_v58 = vld [vmem:[#allocation5 + $0x270] sm:$0xf0] }
 0x133   :  { %v1018_v9 = vpop.f32.mrf.mxu1  ;;  %v3469_v59 = vor.u32 %v4011_v57, %v3466_v58  ;;  %v3954_v57 = vld [vmem:[#allocation5 + $0x94] sm:$0xf0]  ;;  %v4051_v58 = vld [vmem:[#allocation5 + $0x3a4] sm:$0xf] }
 0x134   :  { %v1019_v7 = vadd.f32 %v1018_v9, %v1005_v22 }
 0x135   :  { %2107 = vmatpush.bf16.msra.mxu2 %v3469_v59  ;;  %2066 = vmatpush.bf16.msrb.mxu3 %v3577_v3  ;;  %v3626_v59 = vld [vmem:[#allocation5 + $0x3b0] sm:$0xf0]  ;;  %v3950_v3 = vld [vmem:[#allocation5 + $0x74] sm:$0xf0] }
 0x137   :  { %v1030_v11 = vpop.f32.mrf.mxu2 }
 0x138   :  { %v1031_v36 = vadd.f32 %v1030_v11, %v1017_v29  ;;  %v3560_v11 = vld [vmem:[#allocation5 + $0x320] sm:$0xf]  ;;  %v3962_v29 = vld [vmem:[#allocation5 + $0xd4] sm:$0xf0] }
 0x139   :  { %v1044_v19 = vpop.f32.mrf.mxu3  ;;  %v1058_v23 = vpop.f32.mrf.mxu0  ;;  %2108 = vmatpush.bf16.msra.mxu2 %v3453_v8  ;;  %v3561_v17 = vor.u32 %v4037_v12, %v3560_v11  ;;  %v3265_v42 = vor.u32 %v3962_v29, %v3264_v25  ;;  %v3610_v8 = vld [vmem:[#allocation5 + $0x390] sm:$0xf0]  ;;  %v4043_v25 = vld [vmem:[#allocation5 + $0x364] sm:$0xf] }
 0x13a   :  { %v1045_v47 = vadd.f32 %v1044_v19, %v1031_v36  ;;  %v1059_v1 = vadd.f32 %v1058_v23, %v346_v53  ;;  %v3437_v19 = vor.u32 %v4003_v13, %v3434_v18  ;;  %v4059_v36 = vld [vmem:[#allocation5 + $0x3e4] sm:$0xf]  ;;  %v3200_v18 = vld [vmem:[#allocation5 + $0x48] sm:$0xf] }
 0x13b   :  { %v1072_v40 = vpop.f32.mrf.mxu1  ;;  %2067 = vmatpush.bf16.msrb.mxu3 %v3561_v17  ;;  %v3661_v24 = vor.u32 %v4059_v36, %v3658_v39  ;;  %v3409_v17 = vor.u32 %v3998_v5, %v3408_v4  ;;  %v3376_v36 = vld [vmem:[#allocation5 + $0x1a8] sm:$0xf]  ;;  %v3578_v39 = vld [vmem:[#allocation5 + $0x350] sm:$0xf0]  ;;  %v348_v5 = vperm.slane %v4379_v48, 3 }
 0x13c   :  { %v1073_v14 = vadd.f32 %v1072_v40, %v1059_v1  ;;  %v3216_v1 = vld [vmem:[#allocation5 + $0x68] sm:$0xf] }
 0x13d   :  { %2109 = vmatpush.bf16.msra.mxu2 %v3437_v19  ;;  %v3217_v16 = vor.u32 %v3950_v3, %v3216_v1  ;;  %v3946_v19 = vld [vmem:[#allocation5 + $0x54] sm:$0xf0]  ;;  %v3266_v1 = vld [vmem:[#allocation5 + $0xd8] sm:$0xf0] }
 0x13e   :  { %v3201_v30 = vor.u32 %v3946_v19, %v3200_v18  ;;  %v3250_v18 = vld [vmem:[#allocation5 + $0xb8] sm:$0xf0] }
 0x13f   :  { %v1032_v37 = vpop.f32.mrf.mxu2  ;;  %2068 = vmatpush.bf16.msrb.mxu3 %v3545_v2 }
 0x140   :  { %v1033_v41 = vadd.f32 %v1032_v37, %v1019_v7  ;;  %v3418_v7 = vld [vmem:[#allocation5 + $0x210] sm:$0xf0] }
 0x141   :  { %v1046_v32 = vpop.f32.mrf.mxu3  ;;  %v1060_v55 = vpop.f32.mrf.mxu0  ;;  %v3421_v38 = vor.u32 %v3999_v35, %v3418_v7  ;;  %v3184_v35 = vld [vmem:[#allocation5 + $0x28] sm:$0xf]  ;;  %v3942_v7 = vld [vmem:[#allocation5 + $0x34] sm:$0xf0] }
 0x142   :  { %v1047_v49 = vadd.f32 %v1046_v32, %v1033_v41  ;;  %v1061_v9 = vadd.f32 %v1060_v55, %v346_v53  ;;  %v3249_v53 = vor.u32 %v3958_v45, %v3248_v43  ;;  %v3185_v43 = vor.u32 %v3942_v7, %v3184_v35  ;;  %v3938_v45 = vld [vmem:[#allocation5 + $0x14] sm:$0xf0] }
 0x143   :  { %v1074_v10 = vpop.f32.mrf.mxu1  ;;  %2110 = vmatpush.bf16.msra.mxu2 %v3421_v38  ;;  %2117 = vmatpush.bf16.msra.mxu3 %v3661_v24  ;;  %v4039_v38 = vld [vmem:[#allocation5 + $0x344] sm:$0xf] }
 0x144   :  { %v1217_v54 = vpack.c.bf16 %v1047_v49, %v1045_v47  ;;  %v1075_v21 = vadd.f32 %v1074_v10, %v1061_v9  ;;  %v3642_v47 = vld [vmem:[#allocation5 + $0x3d0] sm:$0xf0]  ;;  %v347_v49 = vperm.slane %v4379_v48, 2 }
 0x145   :  { %v3645_v50 = vor.u32 %v4055_v46, %v3642_v47  ;;  %v3360_v46 = vld [vmem:[#allocation5 + $0x188] sm:$0xf]  ;;  %v3986_v47 = vld [vmem:[#allocation5 + $0x194] sm:$0xf0] }
 0x146   :  { %v1221_v60 = vunpack.c.l.bf16 %v1217_v54  ;;  %v1225_v61 = vunpack.c.h.bf16 %v1217_v54  ;;  %v3232_v54 = vld [vmem:[#allocation5 + $0x88] sm:$0xf] }
 0x147   :  { %v1086_v62 = vpop.f32.mrf.mxu2  ;;  %2118 = vmatpush.bf16.msra.mxu3 %v3645_v50  ;;  %v3233_v0 = vor.u32 %v3954_v57, %v3232_v54  ;;  %v3562_v50 = vld [vmem:[#allocation5 + $0x330] sm:$0xf0]  ;;  %v3344_v57 = vld [vmem:[#allocation5 + $0x168] sm:$0xf] }
 0x148   :  { %4119 = vtanh.f32 %v1221_v60  ;;  %v1087_v22 = vadd.f32 %v1086_v62, %v1073_v14  ;;  %v3629_v62 = vor.u32 %v4051_v58, %v3626_v59  ;;  %v3982_v58 = vld [vmem:[#allocation5 + $0x174] sm:$0xf0] }
 0x149   :  { %4121 = vtanh.f32 %v1225_v61  ;;  %v1100_v6 = vpop.f32.mrf.mxu3  ;;  %v1114_v23 = vpop.f32.mrf.mxu0 }
 0x14a   :  { %v1101_v40 = vadd.f32 %v1100_v6, %v1087_v22  ;;  %v1115_v60 = vadd.f32 %v1114_v23, %v347_v49  ;;  %v4047_v6 = vld [vmem:[#allocation5 + $0x384] sm:$0xf]  ;;  %v3994_v23 = vld [vmem:[#allocation5 + $0x1d4] sm:$0xf0] }
 0x14b   :  { %v1128_v44 = vpop.f32.mrf.mxu1  ;;  %2119 = vmatpush.bf16.msra.mxu3 %v3629_v62  ;;  %v3613_v10 = vor.u32 %v4047_v6, %v3610_v8  ;;  %v3546_v62 = vld [vmem:[#allocation5 + $0x310] sm:$0xf0]  ;;  %v3345_v6 = vor.u32 %v3982_v58, %v3344_v57  ;;  %v3202_v57 = vld [vmem:[#allocation5 + $0x58] sm:$0xf0] }
 0x14c   :  { %v1129_v9 = vadd.f32 %v1128_v44, %v1115_v60  ;;  %v3536_v60 = vld [vmem:[#allocation5 + $0x2e8] sm:$0xf] }
 0x14e   :  { %v4120_v20 = vpop.eup %4119 }
 0x14f   :  { %v4122_v26 = vpop.eup %4121  ;;  %v1088_v27 = vpop.f32.mrf.mxu2  ;;  %2120 = vmatpush.bf16.msra.mxu3 %v3613_v10 }
 0x150   :  { %v1089_v33 = vadd.f32 %v1088_v27, %v1075_v21  ;;  %v4384_v34 = vpack.c.bf16 %v4122_v26, %v4120_v20  ;;  %v3392_v20 = vld [vmem:[#allocation5 + $0x1c8] sm:$0xf]  ;;  %v3594_v26 = vld [vmem:[#allocation5 + $0x370] sm:$0xf0] }
 0x151   :  { %v1102_v37 = vpop.f32.mrf.mxu3  ;;  %v1116_v55 = vpop.f32.mrf.mxu0  ;;  %v3393_v2 = vor.u32 %v3994_v23, %v3392_v20 }
 0x152   :  { %v1103_v41 = vadd.f32 %v1102_v37, %v1089_v33  ;;  %2027 = vmatmul.bf16.vlgmr.msrb.gmra.mxu0 %v4384_v34  ;;  %v1117_v63 = vadd.f32 %v1116_v55, %v347_v49  ;;  %v3990_v37 = vld [vmem:[#allocation5 + $0x1b4] sm:$0xf0]  ;;  %v4035_v49 = vld [vmem:[#allocation5 + $0x324] sm:$0xf] }
 0x153   :  { %2131 = vmatpush.bf16.msrb.mxu0 %v3281_v28  ;;  %v1130_v12 = vpop.f32.mrf.mxu1  ;;  %v3597_v28 = vor.u32 %v4043_v25, %v3594_v26  ;;  %v3377_v44 = vor.u32 %v3990_v37, %v3376_v36  ;;  %v3312_v25 = vld [vmem:[#allocation5 + $0x128] sm:$0xf]  ;;  %v3974_v26 = vld [vmem:[#allocation5 + $0x134] sm:$0xf0] }
 0x154   :  { %v1218_v32 = vpack.c.bf16 %v1103_v41, %v1101_v40  ;;  %v1131_v14 = vadd.f32 %v1130_v12, %v1117_v63  ;;  %v3581_v41 = vor.u32 %v4039_v38, %v3578_v39  ;;  %v4030_v63 = vld [vmem:[#allocation5 + $0x2f4] sm:$0xf0]  ;;  %v3328_v12 = vld [vmem:[#allocation5 + $0x148] sm:$0xf]  ;;  %v3313_v35 = vor.u32 %v3974_v26, %v3312_v25 }
 0x155   :  { %2121 = vmatpush.bf16.msra.mxu3 %v3597_v28  ;;  %v3537_v10 = vor.u32 %v4030_v63, %v3536_v60  ;;  %v3296_v37 = vld [vmem:[#allocation5 + $0x108] sm:$0xf]  ;;  %v3970_v38 = vld [vmem:[#allocation5 + $0x114] sm:$0xf0]  ;;  %v3394_v60 = vld [vmem:[#allocation5 + $0x1d8] sm:$0xf0] }
 0x156   :  { %v1222_v51 = vunpack.c.l.bf16 %v1218_v32  ;;  %v1226_v52 = vunpack.c.h.bf16 %v1218_v32  ;;  %v3168_v32 = vld [vmem:[#allocation5 + $0x8] sm:$0xf] }
 0x157   :  { %2132 = vmatpush.bf16.msrb.mxu0 %v3265_v42  ;;  %v1142_v56 = vpop.f32.mrf.mxu2  ;;  %v3169_v55 = vor.u32 %v3938_v45, %v3168_v32  ;;  %v3488_v39 = vld [vmem:[#allocation5 + $0x288] sm:$0xf]  ;;  %v3410_v32 = vld [vmem:[#allocation5 + $0x1f8] sm:$0xf0] }
 0x158   :  { %4123 = vtanh.f32 %v1222_v51  ;;  %v1143_v15 = vadd.f32 %v1142_v56, %v1129_v9  ;;  %v3964_v51 = vld [vmem:[#allocation5 + $0xec] sm:$0xf]  ;;  %v3361_v56 = vor.u32 %v3986_v47, %v3360_v46  ;;  %v3297_v47 = vor.u32 %v3970_v38, %v3296_v37  ;;  %v3424_v26 = vld [vmem:[#allocation5 + $0x208] sm:$0xf] }
 0x159   :  { %4125 = vtanh.f32 %v1226_v52  ;;  %v1156_v61 = vpop.f32.mrf.mxu3  ;;  %2122 = vmatpush.bf16.msra.mxu3 %v3581_v41  ;;  %v3282_v52 = vld [vmem:[#allocation5 + $0xf8] sm:$0xf0]  ;;  %v4018_v41 = vld [vmem:[#allocation5 + $0x294] sm:$0xf0] }
 0x15a   :  { %v1157_v31 = vadd.f32 %v1156_v61, %v1143_v15  ;;  %v3285_v59 = vor.u32 %v3964_v51, %v3282_v52  ;;  %v4031_v61 = vld [vmem:[#allocation5 + $0x304] sm:$0xf]  ;;  %v3472_v52 = vld [vmem:[#allocation5 + $0x268] sm:$0xf] }
 0x15b   :  { %2133 = vmatpush.bf16.msrb.mxu0 %v3249_v53  ;;  %v3565_v53 = vor.u32 %v4035_v49, %v3562_v50  ;;  %v3549_v3 = vor.u32 %v4031_v61, %v3546_v62  ;;  %v3489_v50 = vor.u32 %v4018_v41, %v3488_v39 }
 0x15d   :  { %2123 = vmatpush.bf16.msra.mxu3 %v3565_v53 }
 0x15e   :  { %v4124_v11 = vpop.eup %4123 }
 0x15f   :  { %v4126_v13 = vpop.eup %4125  ;;  %2134 = vmatpush.bf16.msrb.mxu0 %v3233_v0  ;;  %v1144_v21 = vpop.f32.mrf.mxu2  ;;  %v3960_v0 = vld [vmem:[#allocation5 + $0xcc] sm:$0xf] }
 0x160   :  { %v4388_v22 = vpack.c.bf16 %v4126_v13, %v4124_v11  ;;  %v1145_v27 = vadd.f32 %v1144_v21, %v1131_v14  ;;  %v3269_v11 = vor.u32 %v3960_v0, %v3266_v1  ;;  %v3978_v13 = vld [vmem:[#allocation5 + $0x154] sm:$0xf0]  ;;  %v3520_v14 = vld [vmem:[#allocation5 + $0x2c8] sm:$0xf] }
 0x161   :  { %v1158_v29 = vpop.f32.mrf.mxu3  ;;  %2124 = vmatpush.bf16.msra.mxu3 %v3549_v3  ;;  %v3329_v48 = vor.u32 %v3978_v13, %v3328_v12  ;;  %v3456_v1 = vld [vmem:[#allocation5 + $0x248] sm:$0xf] }
 0x162   :  { %2041 = vmatmul.bf16.vlgmr.msrb.gmra.mxu1 %v4388_v22  ;;  %2083 = vmatmul.bf16.vlgmr.msra.gmra.mxu0 %v4384_v34  ;;  %v1159_v33 = vadd.f32 %v1158_v29, %v1145_v27  ;;  %v3504_v27 = vld [vmem:[#allocation5 + $0x2a8] sm:$0xf]  ;;  %v4022_v29 = vld [vmem:[#allocation5 + $0x2b4] sm:$0xf0] }
 0x163   :  { %2135 = vmatpush.bf16.msrb.mxu0 %v3217_v16  ;;  %2145 = vmatpush.bf16.msrb.mxu1 %v3409_v17  ;;  %v4026_v16 = vld [vmem:[#allocation5 + $0x2d4] sm:$0xf0]  ;;  %v3956_v17 = vld [vmem:[#allocation5 + $0xac] sm:$0xf]  ;;  %v3505_v7 = vor.u32 %v4022_v29, %v3504_v27  ;;  %v3664_v29 = vld [vmem:[#allocation5 + $0x3e8] sm:$0xf] }
 0x164   :  { %v1219_v40 = vpack.c.bf16 %v1159_v33, %v1157_v31  ;;  %v3521_v21 = vor.u32 %v4026_v16, %v3520_v14  ;;  %v3253_v23 = vor.u32 %v3956_v17, %v3250_v18  ;;  %v3234_v31 = vld [vmem:[#allocation5 + $0x98] sm:$0xf0]  ;;  %v3440_v16 = vld [vmem:[#allocation5 + $0x228] sm:$0xf]  ;;  %v4006_v18 = vld [vmem:[#allocation5 + $0x234] sm:$0xf0] }
 0x165   :  { %v4002_v27 = vld [vmem:[#allocation5 + $0x214] sm:$0xf0] }
 0x166   :  { %v1223_v24 = vunpack.c.l.bf16 %v1219_v40  ;;  %v1227_v42 = vunpack.c.h.bf16 %v1219_v40  ;;  %v3425_v37 = vor.u32 %v4002_v27, %v3424_v26  ;;  %v4034_v26 = vld [vmem:[#allocation5 + $0x314] sm:$0xf0]  ;;  %v4000_v27 = vld [vmem:[#allocation5 + $0x20c] sm:$0xf] }
 0x167   :  { %2136 = vmatpush.bf16.msrb.mxu0 %v3201_v30  ;;  %2146 = vmatpush.bf16.msrb.mxu1 %v3393_v2  ;;  %v3952_v30 = vld [vmem:[#allocation5 + $0x8c] sm:$0xf] }
 0x168   :  { %4127 = vtanh.f32 %v1223_v24  ;;  %v3237_v36 = vor.u32 %v3952_v30, %v3234_v31  ;;  %v3948_v24 = vld [vmem:[#allocation5 + $0x6c] sm:$0xf]  ;;  %v4062_v30 = vld [vmem:[#allocation5 + $0x3f4] sm:$0xf0] }
 0x169   :  { %4129 = vtanh.f32 %v1227_v42  ;;  %v1170_v54 = vpop.f32.mrf.mxu0  ;;  %v3218_v42 = vld [vmem:[#allocation5 + $0x78] sm:$0xf0]  ;;  %v3980_v31 = vld [vmem:[#allocation5 + $0x16c] sm:$0xf]  ;;  %v3665_v38 = vor.u32 %v4062_v30, %v3664_v29 }
 0x16a   :  { %v1171_v28 = vadd.f32 %v1170_v54, %v348_v5  ;;  %v3221_v51 = vor.u32 %v3948_v24, %v3218_v42  ;;  %v3648_v24 = vld [vmem:[#allocation5 + $0x3c8] sm:$0xf]  ;;  %v4058_v42 = vld [vmem:[#allocation5 + $0x3d4] sm:$0xf0]  ;;  %v4060_v29 = vld [vmem:[#allocation5 + $0x3ec] sm:$0xf] }
 0x16b   :  { %2137 = vmatpush.bf16.msrb.mxu0 %v3185_v43  ;;  %2147 = vmatpush.bf16.msrb.mxu1 %v3377_v44  ;;  %v1184_v9 = vpop.f32.mrf.mxu1  ;;  %v3996_v44 = vld [vmem:[#allocation5 + $0x1ec] sm:$0xf]  ;;  %v3666_v30 = vld [vmem:[#allocation5 + $0x3f8] sm:$0xf0] }
 0x16c   :  { %v1185_v40 = vadd.f32 %v1184_v9, %v1171_v28  ;;  %v3413_v54 = vor.u32 %v3996_v44, %v3410_v32  ;;  %v3988_v9 = vld [vmem:[#allocation5 + $0x1ac] sm:$0xf]  ;;  %v3330_v44 = vld [vmem:[#allocation5 + $0x158] sm:$0xf0] }
 0x16d   :  { %v4024_v32 = vld [vmem:[#allocation5 + $0x2cc] sm:$0xf] }
 0x16e   :  { %v4128_v4 = vpop.eup %4127 }
 0x16f   :  { %2138 = vmatpush.bf16.msrb.mxu0 %v3169_v55  ;;  %2148 = vmatpush.bf16.msrb.mxu1 %v3361_v56  ;;  %v4130_v8 = vpop.eup %4129  ;;  %v4014_v55 = vld [vmem:[#allocation5 + $0x274] sm:$0xf0]  ;;  %v3944_v56 = vld [vmem:[#allocation5 + $0x4c] sm:$0xf] }
 0x170   :  { %v4393_v15 = vpack.c.bf16 %v4130_v8, %v4128_v4  ;;  %v3473_v63 = vor.u32 %v4014_v55, %v3472_v52  ;;  %v3205_v0 = vor.u32 %v3944_v56, %v3202_v57  ;;  %v3186_v8 = vld [vmem:[#allocation5 + $0x38] sm:$0xf0]  ;;  %v3972_v52 = vld [vmem:[#allocation5 + $0x12c] sm:$0xf] }
 0x171   :  { %v1172_v19 = vpop.f32.mrf.mxu0  ;;  %v3506_v55 = vld [vmem:[#allocation5 + $0x2b8] sm:$0xf0] }
 0x172   :  { %2097 = vmatmul.bf16.vlgmr.msra.gmra.mxu1 %v4388_v22  ;;  %2139 = vmatmul.bf16.vlgmr.msrb.gmra.mxu0 %v4384_v34  ;;  %v1173_v2 = vadd.f32 %v1172_v19, %v348_v5  ;;  %v4010_v5 = vld [vmem:[#allocation5 + $0x254] sm:$0xf0]  ;;  %v3170_v19 = vld [vmem:[#allocation5 + $0x18] sm:$0xf0] }
 0x173   :  { %2187 = vmatpush.bf16.msra.mxu0 %v3285_v59  ;;  %2055 = vmatmul.bf16.vlgmr.msrb.gmra.mxu2 %v4393_v15  ;;  %v1186_v43 = vpop.f32.mrf.mxu1  ;;  %v3992_v59 = vld [vmem:[#allocation5 + $0x1cc] sm:$0xf]  ;;  %v3457_v13 = vor.u32 %v4010_v5, %v3456_v1  ;;  %v4046_v5 = vld [vmem:[#allocation5 + $0x374] sm:$0xf0] }
 0x174   :  { %2149 = vmatpush.bf16.msrb.mxu1 %v3345_v6  ;;  %2159 = vmatpush.bf16.msrb.mxu2 %v3537_v10  ;;  %v1187_v45 = vadd.f32 %v1186_v43, %v1173_v2  ;;  %v3397_v4 = vor.u32 %v3992_v59, %v3394_v60  ;;  %v3940_v6 = vld [vmem:[#allocation5 + $0x2c] sm:$0xf]  ;;  %v3378_v10 = vld [vmem:[#allocation5 + $0x1b8] sm:$0xf0]  ;;  %v4050_v59 = vld [vmem:[#allocation5 + $0x394] sm:$0xf0] }
 0x175   :  { %v3189_v14 = vor.u32 %v3940_v6, %v3186_v8  ;;  %v3381_v17 = vor.u32 %v3988_v9, %v3378_v10  ;;  %v4028_v2 = vld [vmem:[#allocation5 + $0x2ec] sm:$0xf]  ;;  %v3474_v8 = vld [vmem:[#allocation5 + $0x278] sm:$0xf0] }
 0x176   :  { %v3976_v43 = vld [vmem:[#allocation5 + $0x14c] sm:$0xf] }
 0x177   :  { %2188 = vmatpush.bf16.msra.mxu0 %v3269_v11  ;;  %v1198_v20 = vpop.f32.mrf.mxu2  ;;  %v3968_v60 = vld [vmem:[#allocation5 + $0x10c] sm:$0xf] }
 0x178   :  { %2150 = vmatpush.bf16.msrb.mxu1 %v3329_v48  ;;  %2160 = vmatpush.bf16.msrb.mxu2 %v3521_v21  ;;  %v1199_v46 = vadd.f32 %v1198_v20, %v1185_v40  ;;  %v3936_v48 = vld [vmem:[#allocation5 + $0xc] sm:$0xf]  ;;  %v3362_v21 = vld [vmem:[#allocation5 + $0x198] sm:$0xf0] }
 0x179   :  { %v1212_v33 = vpop.f32.mrf.mxu3  ;;  %v3984_v20 = vld [vmem:[#allocation5 + $0x18c] sm:$0xf]  ;;  %v3173_v25 = vor.u32 %v3936_v48, %v3170_v19  ;;  %v4038_v48 = vld [vmem:[#allocation5 + $0x334] sm:$0xf0] }
 0x17a   :  { %v1213_v61 = vadd.f32 %v1212_v33, %v1199_v46  ;;  %v3365_v28 = vor.u32 %v3984_v20, %v3362_v21  ;;  %v3346_v33 = vld [vmem:[#allocation5 + $0x178] sm:$0xf0]  ;;  %v3649_v46 = vor.u32 %v4058_v42, %v3648_v24  ;;  %v4012_v6 = vld [vmem:[#allocation5 + $0x26c] sm:$0xf] }
 0x17b   :  { %2189 = vmatpush.bf16.msra.mxu0 %v3253_v23  ;;  %v3441_v23 = vor.u32 %v4006_v18, %v3440_v16  ;;  %v3349_v40 = vor.u32 %v3980_v31, %v3346_v33  ;;  %v3477_v10 = vor.u32 %v4012_v6, %v3474_v8  ;;  %v3568_v18 = vld [vmem:[#allocation5 + $0x328] sm:$0xf]  ;;  %v4004_v19 = vld [vmem:[#allocation5 + $0x22c] sm:$0xf]  ;;  %v3442_v20 = vld [vmem:[#allocation5 + $0x238] sm:$0xf0]  ;;  %v3669_v33 = vor.u32 %v4060_v29, %v3666_v30 }
 0x17c   :  { %2151 = vmatpush.bf16.msrb.mxu1 %v3313_v35  ;;  %2161 = vmatpush.bf16.msrb.mxu2 %v3505_v7  ;;  %v3538_v35 = vld [vmem:[#allocation5 + $0x2f8] sm:$0xf0]  ;;  %v3569_v21 = vor.u32 %v4038_v48, %v3568_v18  ;;  %v4044_v42 = vld [vmem:[#allocation5 + $0x36c] sm:$0xf]  ;;  %v4455_v8 = vld [vmem:[%s4527_s6] sm:$0xf] }
 0x17d   :  { %v3541_v41 = vor.u32 %v4028_v2, %v3538_v35  ;;  %v4056_v2 = vld [vmem:[#allocation5 + $0x3cc] sm:$0xf]  ;;  %v3650_v35 = vld [vmem:[#allocation5 + $0x3d8] sm:$0xf0]  ;;  %v4071_v18 = vld [vmem:[%s4528_s7 + $0x40] sm:$0xff] }
 0x17e   :  { %v4083_v48 = vld [vmem:[%s4528_s7 + $0xa0] sm:$0xff]  ;;  %v4082_v30 = vld [vmem:[%s4528_s7 + $0x98] sm:$0xff] }
 0x17f   :  { %2190 = vmatpush.bf16.msra.mxu0 %v3237_v36  ;;  %v1200_v49 = vpop.f32.mrf.mxu2 }
 0x180   :  { %v1201_v53 = vadd.f32 %v1200_v49, %v1187_v45  ;;  %2152 = vmatpush.bf16.msrb.mxu1 %v3297_v47  ;;  %2162 = vmatpush.bf16.msrb.mxu2 %v3489_v50  ;;  %v3522_v45 = vld [vmem:[#allocation5 + $0x2d8] sm:$0xf0]  ;;  %v3333_v47 = vor.u32 %v3976_v43, %v3330_v44  ;;  %v3632_v50 = vld [vmem:[#allocation5 + $0x3a8] sm:$0xf] }
 0x181   :  { %v1214_v58 = vpop.f32.mrf.mxu3  ;;  %v3525_v49 = vor.u32 %v4024_v32, %v3522_v45  ;;  %v3602_v43 = vld [vmem:[#allocation5 + $0x378] sm:$0xf0]  ;;  %v4040_v32 = vld [vmem:[#allocation5 + $0x34c] sm:$0xf] }
 0x182   :  { %v1215_v62 = vadd.f32 %v1214_v58, %v1201_v53  ;;  %v3314_v53 = vld [vmem:[#allocation5 + $0x138] sm:$0xf0]  ;;  %v3616_v58 = vld [vmem:[#allocation5 + $0x388] sm:$0xf]  ;;  %v3605_v44 = vor.u32 %v4044_v42, %v3602_v43  ;;  %v4079_v43 = vld [vmem:[%s4528_s7 + $0x80] sm:$0xff] }
 0x183   :  { %2191 = vmatpush.bf16.msra.mxu0 %v3221_v51  ;;  %2153 = vmatmul.bf16.vlgmr.msrb.gmra.mxu1 %v4388_v22  ;;  %v4054_v51 = vld [vmem:[#allocation5 + $0x3b4] sm:$0xf0]  ;;  %v3586_v45 = vld [vmem:[#allocation5 + $0x358] sm:$0xf0] }
 0x184   :  { %v1220_v3 = vpack.c.bf16 %v1215_v62, %v1213_v61  ;;  %2201 = vmatpush.bf16.msra.mxu1 %v3413_v54  ;;  %2111 = vmatmul.bf16.vlgmr.msra.gmra.mxu2 %v4393_v15  ;;  %v4020_v54 = vld [vmem:[#allocation5 + $0x2ac] sm:$0xf]  ;;  %v3633_v56 = vor.u32 %v4054_v51, %v3632_v50  ;;  %v3298_v61 = vld [vmem:[#allocation5 + $0x118] sm:$0xf0] }
 0x185   :  { %2163 = vmatpush.bf16.msrb.mxu2 %v3473_v63  ;;  %v3509_v57 = vor.u32 %v4020_v54, %v3506_v55  ;;  %v4016_v62 = vld [vmem:[#allocation5 + $0x28c] sm:$0xf]  ;;  %v3490_v63 = vld [vmem:[#allocation5 + $0x298] sm:$0xf0]  ;;  %v3301_v1 = vor.u32 %v3968_v60, %v3298_v61  ;;  %v4069_v54 = vld [vmem:[%s4528_s7 + $0x30] sm:$0xff] }
 0x186   :  { %v1224_v11 = vunpack.c.l.bf16 %v1220_v3  ;;  %v1228_v12 = vunpack.c.h.bf16 %v1220_v3  ;;  %v3493_v3 = vor.u32 %v4016_v62, %v3490_v63  ;;  %v4032_v51 = vld [vmem:[#allocation5 + $0x30c] sm:$0xf]  ;;  %v4094_v42 = vld [vmem:[%s4528_s7 + $0xf8] sm:$0xff] }
 0x187   :  { %2192 = vmatpush.bf16.msra.mxu0 %v3205_v0  ;;  %v3617_v0 = vor.u32 %v4050_v59, %v3616_v58  ;;  %v4068_v55 = vld [vmem:[%s4528_s7 + $0x28] sm:$0xff]  ;;  %v4077_v58 = vld [vmem:[%s4528_s7 + $0x70] sm:$0xff] }
 0x188   :  { %4131 = vtanh.f32 %v1224_v11  ;;  %2202 = vmatpush.bf16.msra.mxu1 %v3397_v4  ;;  %v3600_v4 = vld [vmem:[#allocation5 + $0x368] sm:$0xf] }
 0x189   :  { %4133 = vtanh.f32 %v1228_v12  ;;  %2164 = vmatpush.bf16.msrb.mxu2 %v3457_v13  ;;  %v3601_v9 = vor.u32 %v4046_v5, %v3600_v4  ;;  %v3584_v11 = vld [vmem:[#allocation5 + $0x348] sm:$0xf]  ;;  %v4042_v12 = vld [vmem:[#allocation5 + $0x354] sm:$0xf0]  ;;  %v4008_v13 = vld [vmem:[#allocation5 + $0x24c] sm:$0xf] }
 0x18a   :  { %v3585_v16 = vor.u32 %v4042_v12, %v3584_v11  ;;  %v4064_v61 = vld [vmem:[%s4528_s7 + $0x8] sm:$0xff]  ;;  %v4074_v4 = vld [vmem:[%s4528_s7 + $0x58] sm:$0xff]  ;;  %v4085_v11 = vld [vmem:[%s4528_s7 + $0xb0] sm:$0xff]  ;;  %v1371_v12 = vperm.slane %v4455_v8, 0 }
 0x18b   :  { %2193 = vmatpush.bf16.msra.mxu0 %v3189_v14  ;;  %v3458_v14 = vld [vmem:[#allocation5 + $0x258] sm:$0xf0]  ;;  %v4076_v62 = vld [vmem:[%s4528_s7 + $0x68] sm:$0xff] }
 0x18c   :  { %2203 = vmatpush.bf16.msra.mxu1 %v3381_v17  ;;  %v3461_v17 = vor.u32 %v4008_v13, %v3458_v14  ;;  %v4086_v5 = vld [vmem:[%s4528_s7 + $0xb8] sm:$0xff]  ;;  %v4072_v14 = vld [vmem:[%s4528_s7 + $0x48] sm:$0xff] }
 0x18d   :  { %2165 = vmatpush.bf16.msrb.mxu2 %v3441_v23  ;;  %v3445_v23 = vor.u32 %v4004_v19, %v3442_v20 }
 0x18e   :  { %v4132_v7 = vpop.eup %4131 }
 0x18f   :  { %v4134_v36 = vpop.eup %4133  ;;  %2194 = vmatpush.bf16.msra.mxu0 %v3173_v25  ;;  %v3552_v25 = vld [vmem:[#allocation5 + $0x308] sm:$0xf] }
 0x190   :  { %2204 = vmatpush.bf16.msra.mxu1 %v3365_v28  ;;  %v4400_v39 = vpack.c.bf16 %v4134_v36, %v4132_v7  ;;  %v3426_v28 = vld [vmem:[#allocation5 + $0x218] sm:$0xf0]  ;;  %v3553_v31 = vor.u32 %v4034_v26, %v3552_v25  ;;  %v3653_v7 = vor.u32 %v4056_v2, %v3650_v35  ;;  %v4052_v36 = vld [vmem:[#allocation5 + $0x3ac] sm:$0xf]  ;;  %v4081_v35 = vld [vmem:[%s4528_s7 + $0x90] sm:$0xff] }
 0x191   :  { %2166 = vmatpush.bf16.msrb.mxu2 %v3425_v37  ;;  %v3634_v37 = vld [vmem:[#allocation5 + $0x3b8] sm:$0xf0] }
 0x192   :  { %2069 = vmatmul.bf16.vlgmr.msrb.gmra.mxu3 %v4400_v39  ;;  %2195 = vmatmul.bf16.vlgmr.msra.gmra.mxu0 %v4384_v34  ;;  %v3317_v34 = vor.u32 %v3972_v52, %v3314_v53  ;;  %v4070_v53 = vld [vmem:[%s4528_s7 + $0x38] sm:$0xff] }
 0x193   :  { %2173 = vmatpush.bf16.msrb.mxu3 %v3665_v38  ;;  %v3637_v38 = vor.u32 %v4052_v36, %v3634_v37  ;;  %2527 = vmatpush.bf16.msrb.mxu0 %v4070_v53 }
 0x194   :  { %2205 = vmatpush.bf16.msra.mxu1 %v3349_v40  ;;  %2167 = vmatmul.bf16.vlgmr.msrb.gmra.mxu2 %v4393_v15  ;;  %v4048_v40 = vld [vmem:[#allocation5 + $0x38c] sm:$0xf] }
 0x195   :  { %2215 = vmatpush.bf16.msra.mxu2 %v3541_v41  ;;  %v3618_v41 = vld [vmem:[#allocation5 + $0x398] sm:$0xf0] }
 0x196   :  { %v3621_v24 = vor.u32 %v4048_v40, %v3618_v41 }
 0x197   :  { %2174 = vmatpush.bf16.msrb.mxu3 %v3649_v46  ;;  %v3589_v46 = vor.u32 %v4040_v32, %v3586_v45  ;;  %2528 = vmatpush.bf16.msrb.mxu0 %v4069_v54 }
 0x198   :  { %2206 = vmatpush.bf16.msra.mxu1 %v3333_v47  ;;  %v4036_v47 = vld [vmem:[#allocation5 + $0x32c] sm:$0xf] }
 0x199   :  { %2216 = vmatpush.bf16.msra.mxu2 %v3525_v49  ;;  %v3570_v49 = vld [vmem:[#allocation5 + $0x338] sm:$0xf0] }
 0x19a   :  { %v3573_v50 = vor.u32 %v4036_v47, %v3570_v49 }
 0x19b   :  { %2175 = vmatpush.bf16.msrb.mxu3 %v3633_v56  ;;  %2529 = vmatpush.bf16.msrb.mxu0 %v4068_v55  ;;  %v4067_v56 = vld [vmem:[%s4528_s7 + $0x20] sm:$0xff]  ;;  %v4093_v55 = vld [vmem:[%s4528_s7 + $0xf0] sm:$0xff] }
 0x19c   :  { %2207 = vmatpush.bf16.msra.mxu1 %v3317_v34  ;;  %v4078_v34 = vld [vmem:[%s4528_s7 + $0x78] sm:$0xff] }
 0x19d   :  { %2217 = vmatpush.bf16.msra.mxu2 %v3509_v57  ;;  %v4065_v57 = vld [vmem:[%s4528_s7 + $0x10] sm:$0xff] }
 0x19f   :  { %2176 = vmatpush.bf16.msrb.mxu3 %v3617_v0  ;;  %2530 = vmatpush.bf16.msrb.mxu0 %v4067_v56  ;;  %v4063_v0 = vld [vmem:[%s4528_s7] sm:$0xff] }
 0x1a0   :  { %2208 = vmatpush.bf16.msra.mxu1 %v3301_v1  ;;  %v4075_v1 = vld [vmem:[%s4528_s7 + $0x60] sm:$0xff] }
 0x1a1   :  { %2218 = vmatpush.bf16.msra.mxu2 %v3493_v3 }
 0x1a2   :  { %2125 = vmatmul.bf16.vlgmr.msra.gmra.mxu3 %v4400_v39 }
 0x1a3   :  { %2177 = vmatpush.bf16.msrb.mxu3 %v3601_v9  ;;  %2209 = vmatmul.bf16.vlgmr.msra.gmra.mxu1 %v4388_v22  ;;  %v3429_v22 = vor.u32 %v4000_v27, %v3426_v28 }
 0x1a4   :  { %2541 = vmatpush.bf16.msrb.mxu1 %v4078_v34 }
 0x1a5   :  { %2219 = vmatpush.bf16.msra.mxu2 %v3477_v10  ;;  %v4073_v10 = vld [vmem:[%s4528_s7 + $0x50] sm:$0xff] }
 0x1a7   :  { %2178 = vmatpush.bf16.msrb.mxu3 %v3585_v16  ;;  %v4084_v16 = vld [vmem:[%s4528_s7 + $0xa8] sm:$0xff] }
 0x1a8   :  { %2542 = vmatpush.bf16.msrb.mxu1 %v4077_v58  ;;  %v4092_v58 = vld [vmem:[%s4528_s7 + $0xe8] sm:$0xff] }
 0x1a9   :  { %2220 = vmatpush.bf16.msra.mxu2 %v3461_v17 }
 0x1ab   :  { %2179 = vmatpush.bf16.msrb.mxu3 %v3569_v21 }
 0x1ac   :  { %2543 = vmatpush.bf16.msrb.mxu1 %v4076_v62  ;;  %v1373_v62 = vperm.slane %v4455_v8, 2 }
 0x1ad   :  { %2221 = vmatpush.bf16.msra.mxu2 %v3445_v23 }
 0x1af   :  { %2180 = vmatpush.bf16.msrb.mxu3 %v3553_v31 }
 0x1b0   :  { %2544 = vmatpush.bf16.msrb.mxu1 %v4075_v1 }
 0x1b1   :  { %2222 = vmatpush.bf16.msra.mxu2 %v3429_v22 }
 0x1b2   :  { %2181 = vmatmul.bf16.vlgmr.msrb.gmra.mxu3 %v4400_v39 }
 0x1b3   :  { %2229 = vmatpush.bf16.msra.mxu3 %v3669_v33 }
 0x1b4   :  { %2223 = vmatmul.bf16.vlgmr.msra.gmra.mxu2 %v4393_v15  ;;  %v3554_v15 = vld [vmem:[#allocation5 + $0x318] sm:$0xf0]  ;;  %2545 = vmatpush.bf16.msrb.mxu1 %v4074_v4 }
 0x1b5   :  { %v3557_v52 = vor.u32 %v4032_v51, %v3554_v15  ;;  %2555 = vmatpush.bf16.msrb.mxu2 %v4086_v5 }
 0x1b7   :  { %2230 = vmatpush.bf16.msra.mxu3 %v3653_v7 }
 0x1b8   :  { %2546 = vmatpush.bf16.msrb.mxu1 %v4073_v10 }
 0x1b9   :  { %2556 = vmatpush.bf16.msrb.mxu2 %v4085_v11  ;;  %v4090_v11 = vld [vmem:[%s4528_s7 + $0xd8] sm:$0xff] }
 0x1bb   :  { %2231 = vmatpush.bf16.msra.mxu3 %v3637_v38  ;;  %v1372_v38 = vperm.slane %v4455_v8, 1 }
 0x1bc   :  { %2547 = vmatpush.bf16.msrb.mxu1 %v4072_v14 }
 0x1bd   :  { %2557 = vmatpush.bf16.msrb.mxu2 %v4084_v16 }
 0x1bf   :  { %2232 = vmatpush.bf16.msra.mxu3 %v3621_v24  ;;  %v4080_v24 = vld [vmem:[%s4528_s7 + $0x88] sm:$0xff] }
 0x1c0   :  { %2548 = vmatpush.bf16.msrb.mxu1 %v4071_v18 }
 0x1c1   :  { %2558 = vmatpush.bf16.msrb.mxu2 %v4083_v48 }
 0x1c3   :  { %2233 = vmatpush.bf16.msra.mxu3 %v3605_v44 }
 0x1c5   :  { %2559 = vmatpush.bf16.msrb.mxu2 %v4082_v30 }
 0x1c7   :  { %2234 = vmatpush.bf16.msra.mxu3 %v3589_v46 }
 0x1c9   :  { %2560 = vmatpush.bf16.msrb.mxu2 %v4081_v35 }
 0x1cb   :  { %2235 = vmatpush.bf16.msra.mxu3 %v3573_v50 }
 0x1cd   :  { %2561 = vmatpush.bf16.msrb.mxu2 %v4080_v24 }
 0x1cf   :  { %2236 = vmatpush.bf16.msra.mxu3 %v3557_v52  ;;  %v2028_v59 = vpop.f32.mrf.mxu0 }
 0x1d0   :  { %v2029_v19 = vadd.f32 %v2028_v59, %v1371_v12 }
 0x1d1   :  { %2562 = vmatpush.bf16.msrb.mxu2 %v4079_v43 }
 0x1d2   :  { %2237 = vmatmul.bf16.vlgmr.msra.gmra.mxu3 %v4400_v39  ;;  %v4066_v39 = vld [vmem:[%s4528_s7 + $0x18] sm:$0xff] }
 0x1d3   :  { %2531 = vmatpush.bf16.msrb.mxu0 %v4066_v39  ;;  %2569 = vmatpush.bf16.msrb.mxu3 %v4094_v42 }
 0x1d7   :  { %2532 = vmatpush.bf16.msrb.mxu0 %v4065_v57  ;;  %v2030_v3 = vpop.f32.mrf.mxu0  ;;  %2570 = vmatpush.bf16.msrb.mxu3 %v4093_v55 }
 0x1d8   :  { %v2031_v20 = vadd.f32 %v2030_v3, %v1371_v12 }
 0x1db   :  { %2533 = vmatpush.bf16.msrb.mxu0 %v4064_v61  ;;  %2571 = vmatpush.bf16.msrb.mxu3 %v4092_v58  ;;  %v4091_v61 = vld [vmem:[%s4528_s7 + $0xe0] sm:$0xff] }
 0x1df   :  { %v2042_v60 = vpop.f32.mrf.mxu1  ;;  %2534 = vmatpush.bf16.msrb.mxu0 %v4063_v0  ;;  %v2084_v17 = vpop.f32.mrf.mxu0  ;;  %2572 = vmatpush.bf16.msrb.mxu3 %v4091_v61 }
 0x1e0   :  { %v2043_v23 = vadd.f32 %v2042_v60, %v2029_v19  ;;  %v2085_v44 = vadd.f32 %v2084_v17, %v1372_v38  ;;  %v4089_v19 = vld [vmem:[%s4528_s7 + $0xd0] sm:$0xff] }
 0x1e3   :  { %2573 = vmatpush.bf16.msrb.mxu3 %v4090_v11 }
 0x1e7   :  { %v2044_v6 = vpop.f32.mrf.mxu1  ;;  %v2086_v2 = vpop.f32.mrf.mxu0  ;;  %2574 = vmatpush.bf16.msrb.mxu3 %v4089_v19 }
 0x1e8   :  { %v2045_v25 = vadd.f32 %v2044_v6, %v2031_v20  ;;  %v2087_v32 = vadd.f32 %v2086_v2, %v1372_v38 }
 0x1ef   :  { %v2098_v21 = vpop.f32.mrf.mxu1  ;;  %v2140_v50 = vpop.f32.mrf.mxu0 }
 0x1f0   :  { %v2099_v46 = vadd.f32 %v2098_v21, %v2085_v44  ;;  %v2141_v3 = vadd.f32 %v2140_v50, %v1373_v62 }
 0x1f6   :  { %v2056_v63 = vpop.f32.mrf.mxu2 }
 0x1f7   :  { %v2057_v27 = vadd.f32 %v2056_v63, %v2043_v23  ;;  %v2100_v37 = vpop.f32.mrf.mxu1  ;;  %v2142_v63 = vpop.f32.mrf.mxu0 }
 0x1f8   :  { %v2101_v47 = vadd.f32 %v2100_v37, %v2087_v32  ;;  %v2143_v4 = vadd.f32 %v2142_v63, %v1373_v62 }
 0x1fe   :  { %v2058_v9 = vpop.f32.mrf.mxu2 }
 0x1ff   :  { %v2059_v28 = vadd.f32 %v2058_v9, %v2045_v25  ;;  %v4088_v25 = vld [vmem:[%s4528_s7 + $0xc8] sm:$0xff] }
 0x200   :  { %v2154_v53 = vpop.f32.mrf.mxu1  ;;  %2575 = vmatpush.bf16.msrb.mxu3 %v4088_v25 }
 0x201   :  { %v2155_v9 = vadd.f32 %v2154_v53, %v2141_v3 }
 0x207   :  { %v2112_v26 = vpop.f32.mrf.mxu2 }
 0x208   :  { %v2113_v51 = vadd.f32 %v2112_v26, %v2099_v46  ;;  %v2156_v1 = vpop.f32.mrf.mxu1  ;;  %v4087_v26 = vld [vmem:[%s4528_s7 + $0xc0] sm:$0xff] }
 0x209   :  { %v2157_v10 = vadd.f32 %v2156_v1, %v2143_v4  ;;  %2576 = vmatpush.bf16.msrb.mxu3 %v4087_v26 }
 0x20f   :  { %v2114_v40 = vpop.f32.mrf.mxu2 }
 0x210   :  { %v2115_v15 = vadd.f32 %v2114_v40, %v2101_v47 }
 0x215   :  { %v2070_v13 = vpop.f32.mrf.mxu3 }
 0x216   :  { %v2071_v31 = vadd.f32 %v2070_v13, %v2057_v27  ;;  %v2196_v27 = vpop.f32.mrf.mxu0 }
 0x217   :  { %v2168_v34 = vpop.f32.mrf.mxu2 }
 0x218   :  { %v2169_v13 = vadd.f32 %v2168_v34, %v2155_v9 }
 0x21d   :  { %v2072_v29 = vpop.f32.mrf.mxu3 }
 0x21e   :  { %v2073_v22 = vadd.f32 %v2072_v29, %v2059_v28  ;;  %v2198_v2 = vpop.f32.mrf.mxu0 }
 0x21f   :  { %v2170_v5 = vpop.f32.mrf.mxu2 }
 0x220   :  { %v2243_v33 = vpack.c.bf16 %v2073_v22, %v2071_v31  ;;  %v2171_v14 = vadd.f32 %v2170_v5, %v2157_v10  ;;  %v2210_v29 = vpop.f32.mrf.mxu1 }
 0x222   :  { %v2247_v7 = vunpack.c.l.bf16 %v2243_v33  ;;  %v2251_v36 = vunpack.c.h.bf16 %v2243_v33  ;;  %v1374_v33 = vperm.slane %v4455_v8, 3 }
 0x224   :  { %4135 = vtanh.f32 %v2247_v7  ;;  %v2199_v37 = vadd.f32 %v2198_v2, %v1374_v33 }
 0x225   :  { %4137 = vtanh.f32 %v2251_v36  ;;  %v2126_v41 = vpop.f32.mrf.mxu3  ;;  %v2197_v36 = vadd.f32 %v2196_v27, %v1374_v33 }
 0x226   :  { %v2127_v56 = vadd.f32 %v2126_v41, %v2113_v51 }
 0x227   :  { %v2211_v40 = vadd.f32 %v2210_v29, %v2197_v36 }
 0x228   :  { %v2212_v7 = vpop.f32.mrf.mxu1 }
 0x229   :  { %v2213_v41 = vadd.f32 %v2212_v7, %v2199_v37 }
 0x22a   :  { %v4136_v45 = vpop.eup %4135 }
 0x22b   :  { %v4138_v49 = vpop.eup %4137 }
 0x22c   :  { %v2263_v52 = vpack.c.bf16 %v4138_v49, %v4136_v45 }
 0x22d   :  { %v2128_v54 = vpop.f32.mrf.mxu3 }
 0x22e   :  { %v2129_v39 = vadd.f32 %v2128_v54, %v2115_v15  ;;  %2535 = vmatmul.bf16.vlgmr.msrb.gmra.mxu0 %v2263_v52  ;;  %v4102_v15 = vld [vmem:[%s4529_s8] ss:$0 sm:$0xff]  ;;  %s2592_s8 = sshll.u32 %s4530_s9, 4  ;;  %s2593_s8 = int_to_ptr.hbm [resolvable:$true] %s2592_s8 }
 0x230   :  { %v2244_v57 = vpack.c.bf16 %v2129_v39, %v2127_v56 }
 0x232   :  { %v2248_v59 = vunpack.c.l.bf16 %v2244_v57  ;;  %v2252_v60 = vunpack.c.h.bf16 %v2244_v57 }
 0x234   :  { %4139 = vtanh.f32 %v2248_v59 }
 0x235   :  { %4141 = vtanh.f32 %v2252_v60  ;;  %v2182_v0 = vpop.f32.mrf.mxu3 }
 0x236   :  { %v2183_v18 = vadd.f32 %v2182_v0, %v2169_v13 }
 0x237   :  { %v2224_v31 = vpop.f32.mrf.mxu2 }
 0x238   :  { %v2225_v24 = vadd.f32 %v2224_v31, %v2211_v40 }
 0x23a   :  { %v4140_v6 = vpop.eup %4139 }
 0x23b   :  { %v4142_v12 = vpop.eup %4141 }
 0x23c   :  { %v2264_v16 = vpack.c.bf16 %v4142_v12, %v4140_v6 }
 0x23d   :  { %v2184_v17 = vpop.f32.mrf.mxu3 }
 0x23e   :  { %v2185_v48 = vadd.f32 %v2184_v17, %v2171_v14  ;;  %2549 = vmatmul.bf16.vlgmr.msrb.gmra.mxu1 %v2264_v16 }
 0x23f   :  { %v2226_v38 = vpop.f32.mrf.mxu2 }
 0x240   :  { %v2245_v20 = vpack.c.bf16 %v2185_v48, %v2183_v18  ;;  %v2227_v42 = vadd.f32 %v2226_v38, %v2213_v41 }
 0x242   :  { %v2249_v21 = vunpack.c.l.bf16 %v2245_v20  ;;  %v2253_v23 = vunpack.c.h.bf16 %v2245_v20 }
 0x244   :  { %4143 = vtanh.f32 %v2249_v21 }
 0x245   :  { %4145 = vtanh.f32 %v2253_v23 }
 0x24a   :  { %v4144_v28 = vpop.eup %4143 }
 0x24b   :  { %v4146_v30 = vpop.eup %4145 }
 0x24c   :  { %v2265_v22 = vpack.c.bf16 %v4146_v30, %v4144_v28 }
 0x24e   :  { %2563 = vmatmul.bf16.vlgmr.msrb.gmra.mxu2 %v2265_v22 }
 0x255   :  { %v2238_v35 = vpop.f32.mrf.mxu3 }
 0x256   :  { %v2239_v44 = vadd.f32 %v2238_v35, %v2225_v24 }
 0x25d   :  { %v2240_v43 = vpop.f32.mrf.mxu3 }
 0x25e   :  { %v2241_v32 = vadd.f32 %v2240_v43, %v2227_v42 }
 0x260   :  { %v2246_v45 = vpack.c.bf16 %v2241_v32, %v2239_v44 }
 0x262   :  { %v2250_v46 = vunpack.c.l.bf16 %v2246_v45  ;;  %v2254_v47 = vunpack.c.h.bf16 %v2246_v45 }
 0x264   :  { %4147 = vtanh.f32 %v2250_v46 }
 0x265   :  { %4149 = vtanh.f32 %v2254_v47 }
 0x26a   :  { %v4148_v49 = vpop.eup %4147 }
 0x26b   :  { %v4150_v8 = vpop.eup %4149 }
 0x26c   :  { %v2266_v50 = vpack.c.bf16 %v4150_v8, %v4148_v49 }
 0x26e   :  { %2577 = vmatmul.bf16.vlgmr.msrb.gmra.mxu3 %v2266_v50 }
 0x2ab   :  { %v2536_v51 = vpop.f32.mrf.mxu0 }
 0x2ac   :  { %v2537_v54 = vadd.f32 %v4102_v15, %v2536_v51 }
 0x2b3   :  { %v2538_v39 = vpop.f32.mrf.mxu0 }
 0x2b4   :  { %v2539_v59 = vadd.f32 %v4102_v15, %v2538_v39 }
 0x2bb   :  { %v2550_v52 = vpop.f32.mrf.mxu1 }
 0x2bc   :  { %v2551_v55 = vadd.f32 %v2550_v52, %v2537_v54 }
 0x2c3   :  { %v2552_v58 = vpop.f32.mrf.mxu1 }
 0x2c4   :  { %v2553_v61 = vadd.f32 %v2552_v58, %v2539_v59 }
 0x2d1   :  { %v2564_v53 = vpop.f32.mrf.mxu2 }
 0x2d2   :  { %v2565_v56 = vadd.f32 %v2564_v53, %v2551_v55 }
 0x2d9   :  { %v2566_v60 = vpop.f32.mrf.mxu2 }
 0x2da   :  { %v2567_v62 = vadd.f32 %v2566_v60, %v2553_v61 }
 0x2f1   :  { %v2578_v34 = vpop.f32.mrf.mxu3 }
 0x2f2   :  { %v2579_v57 = vadd.f32 %v2578_v34, %v2565_v56 }
 0x2f4   :  { %2584 = vst.msk [vmem:[#allocation7] sm:$0xff] %vm2583_vm1, %v2579_v57 }
 0x2f9   :  { %v2580_v63 = vpop.f32.mrf.mxu3 }
 0x2fa   :  { %v2581_v0 = vadd.f32 %v2580_v63, %v2567_v62 }
 0x2fc   :  { %2585 = vst.msk [vmem:[#allocation7 + $0x8] sm:$0xff] %vm2583_vm1, %v2581_v0 }
 0x2fd   :  { %2598 = dma.vmem_to_hbm [thread:$0]  %s2591_s3, 256, %s2593_s8, [#allocation4], %s4234_s23, %s4234_s23, %s4235_s5  }
 0x2fe   :  { %4227 = dma.done.wait [#allocation4], 256  }
 0x2ff   :  { %4228 = vsyncadd [#allocation4], 4294967040 }
 0x300   :  { %2603 = vsyncpa [#allocation3], 1 }
 0x301   :  { %2604 = vsyncpa [#allocation6], 1 }
 0x302   :  { %2605 = vsyncpa [#allocation4], 1 }

</bundles_post_ra>
